<compile_context>
chip_gen: v5e
topology: v5e:2x2
jax: 0.10.0
libtpu: 0.0.40
codegen_flags: <defaults>
</compile_context>

<pallas_src>
import functools
import math

import numpy as np
import jax
import jax.numpy as jnp
from jax.experimental import pallas as pl
from jax.experimental.pallas import tpu as pltpu

NEG_INF = -1e30  # masked-fill value; exp underflows to exactly 0.0 in f32


# --------------------------------------------------------------------------- #
# Kernel
# --------------------------------------------------------------------------- #
def self_monitoring_kernel(nav_ref, pre_ref, ctx_ref, h0_ref, c0_ref,
                           navmask_ref, ctxmask_ref,
                           w_proj_ref, w_misc_ref, w_lstm_ref, vec_ref,
                           out_ref):
    f32 = jnp.float32
    bf16 = jnp.bfloat16
    BT, N, F = nav_ref.shape
    _, S, H = ctx_ref.shape
    D = w_proj_ref.shape[1]
    slot_w = out_ref.shape[1] // 7        # 128-aligned lane slot per output field

    h0 = h0_ref[...]
    c0 = c0_ref[...]
    nav_mask = navmask_ref[...]
    ctx_mask = ctxmask_ref[...]

    # ---- proj_navigable_mlp (Linear+ReLU); bf16 MXU operands, f32 accum -----
    b_proj = vec_ref[0:1, 0:D]
    nav_flat = nav_ref[...].reshape(BT * N, F).astype(bf16)
    proj_nav = jnp.maximum(
        jnp.dot(nav_flat, w_proj_ref[...], preferred_element_type=f32) + b_proj,
        0.0)
    proj_nav = proj_nav.reshape(BT, N, D) * nav_mask[:, :, None]
    proj_pre = jnp.maximum(
        jnp.dot(pre_ref[...].astype(bf16), w_proj_ref[...],
                preferred_element_type=f32) + b_proj, 0.0)

    # ---- fused h0 matmul: outputs [h1_fc(h0) | h0_fc(h0) | h2_fc(h0-half)] --
    h0_fused = (jnp.dot(h0.astype(bf16), w_misc_ref[0:H, :],
                        preferred_element_type=f32)
                + vec_ref[1:2, 0:2 * H + D])
    h1p = h0_fused[:, 0:H]
    h0p = h0_fused[:, H:H + D]
    h2h = h0_fused[:, H + D:2 * H + D]              # includes b_h2

    # ---- LSTM gates, half A (does NOT depend on attention) ------------------
    lhs_a = jnp.concatenate([proj_pre, h0], axis=1).astype(bf16)      # (BT, D+H)
    gates = (jnp.dot(lhs_a, w_lstm_ref[0:D + H, :], preferred_element_type=f32)
             + vec_ref[2:3, 0:4 * H])

    # ---- SoftAttention over positioned ctx (f32 VPU/XLU/EUP) ----------------
    pos_ctx = ctx_ref[...]
    ctx_scores = jnp.sum(pos_ctx * h1p[:, None, :], axis=2)          # (BT, S)
    ctx_scores = jnp.where(ctx_mask == 0, NEG_INF, ctx_scores)
    ctx_scores = ctx_scores - jnp.max(ctx_scores, axis=1, keepdims=True)
    ctx_e = jnp.exp(ctx_scores)
    ctx_attn = ctx_e / jnp.sum(ctx_e, axis=1, keepdims=True)
    weighted_ctx = jnp.sum(ctx_attn[:, :, None] * pos_ctx, axis=1)   # (BT, H)

    # ---- SoftAttention over projected navigable features --------------------
    img_scores = jnp.sum(proj_nav * h0p[:, None, :], axis=2)         # (BT, N)
    img_scores = jnp.where(nav_mask == 0, NEG_INF, img_scores)
    img_scores = img_scores - jnp.max(img_scores, axis=1, keepdims=True)
    img_e = jnp.exp(img_scores)
    img_attn = img_e / jnp.sum(img_e, axis=1, keepdims=True)
    weighted_img = jnp.sum(img_attn[:, :, None] * proj_nav, axis=1)  # (BT, D)

    # ---- LSTM gates, half B; columns pre-ordered [i|f|o|g] -------------------
    lhs_b = jnp.concatenate([weighted_img, weighted_ctx], axis=1).astype(bf16)
    gates = gates + jnp.dot(lhs_b, w_lstm_ref[D + H:, :],
                            preferred_element_type=f32)
    sig = jax.nn.sigmoid(gates[:, 0:3 * H])
    i_g = sig[:, 0:H]
    f_g = sig[:, H:2 * H]
    o_g = sig[:, 2 * H:3 * H]
    g_g = jnp.tanh(gates[:, 3 * H:4 * H])
    c1 = f_g * c0 + i_g * g_g
    h1 = o_g * jnp.tanh(c1)

    # ---- fused logit_fc + h2_fc_lstm (weighted_img half), block-diagonal ----
    lhs2 = jnp.concatenate([weighted_ctx, h1, weighted_img], axis=1).astype(bf16)
    fused2 = jnp.dot(lhs2, w_misc_ref[H:, :], preferred_element_type=f32)
    h_tilde = fused2[:, 0:D] + vec_ref[3:4, 0:D]                     # (BT, D)
    img2h = fused2[:, D:D + H]                                       # w_img @ W_h2_img
    logit = jnp.sum(proj_nav * h_tilde[:, None, :], axis=2)          # (BT, N)

    # ---- value head ----------------------------------------------------------
    cvi = h2h + img2h                  # = h0@W_h2_h + w_img@W_h2_img + b_h2
    h1_value = jax.nn.sigmoid(cvi) * jnp.tanh(c1)                    # (BT, H)
    w_c_ctx = vec_ref[4:5, 0:S]
    w_c_h = vec_ref[4:5, S:S + H]
    b_c = vec_ref[4:5, S + H:S + H + 1]
    value = jnp.tanh(jnp.sum(ctx_attn * w_c_ctx, axis=1, keepdims=True)
                     + jnp.sum(h1_value * w_c_h, axis=1, keepdims=True)
                     + b_c)            # monitor_sigmoid = False -> Tanh, (BT, 1)

    # ---- single lane-dense store; every field at a 128-aligned lane offset --
    def slot(x):
        pad = slot_w - x.shape[1]
        if pad == 0:
            return x
        return jnp.concatenate([x, jnp.zeros((BT, pad), f32)], axis=1)

    out_ref[...] = jnp.concatenate(
        [slot(h1), slot(c1), slot(weighted_ctx), slot(img_attn),
         slot(ctx_attn), slot(logit), slot(value)], axis=1)


# --------------------------------------------------------------------------- #
# Host-side helpers
# --------------------------------------------------------------------------- #
@functools.lru_cache(maxsize=None)
def positional_encoding(max_len, d_model):
    """Returns a host numpy array so the cache never holds a jit tracer."""
    position = np.arange(max_len, dtype=np.float64)[:, None]
    div_term = np.exp(np.arange(0, d_model, 2, dtype=np.float64)
                      * -(math.log(10000.0) / d_model))
    pe = np.zeros((max_len, d_model), dtype=np.float32)
    pe[:, 0::2] = np.sin(position * div_term)
    pe[:, 1::2] = np.cos(position * div_term)
    return pe


def create_mask(batch_size, max_length, lengths):
    del batch_size  # kept for API parity with the PyTorch helper
    lengths = jnp.asarray(lengths, dtype=jnp.int32)
    return (jnp.arange(max_length, dtype=jnp.int32)[None, :]
            < lengths[:, None]).astype(jnp.float32)


def init_params(key, F, D, H, S):
    """Deterministic synthetic parameters (PyTorch layouts transposed to (in, out))."""
    ks = jax.random.split(key, 16)
    n = lambda k, shape, s=0.05: (s * jax.random.normal(k, shape)).astype(jnp.float32)
    p = {}
    p["w_proj"] = n(ks[0], (F, D)); p["b_proj"] = n(ks[1], (1, D))
    p["w_h0"] = n(ks[2], (H, D));   p["b_h0"] = n(ks[3], (1, D))
    p["w_h1"] = n(ks[4], (H, H));   p["b_h1"] = n(ks[5], (1, H))
    # LSTMCell: input = [proj_pre(D) | weighted_img(D) | weighted_ctx(H)], gates = 4H (i|f|g|o)
    w_ih = n(ks[6], (2 * D + H, 4 * H))
    p["w_ih_pre"] = w_ih[:D]; p["w_ih_img"] = w_ih[D:2 * D]; p["w_ih_ctx"] = w_ih[2 * D:]
    p["w_hh"] = n(ks[7], (H, 4 * H))
    p["b_gates"] = n(ks[8], (1, 4 * H))          # b_ih + b_hh folded together
    # logit_fc: in = [weighted_ctx(H) | h1(H)] -> D
    w_logit = n(ks[9], (2 * H, D))
    p["w_logit_ctx"] = w_logit[:H]; p["w_logit_h"] = w_logit[H:]
    p["b_logit"] = n(ks[10], (1, D))
    # h2_fc_lstm: in = [h0(H) | weighted_img(D)] -> H
    w_h2 = n(ks[11], (H + D, H))
    p["w_h2_h"] = w_h2[:H]; p["w_h2_img"] = w_h2[H:]
    p["b_h2"] = n(ks[12], (1, H))
    # critic: in = [ctx_attn(S) | h1_value(H)] -> 1  (stored as row vectors)
    w_c = n(ks[13], (1, S + H))
    p["w_c_ctx"] = w_c[:, :S]; p["w_c_h"] = w_c[:, S:]
    p["b_c"] = n(ks[14], (1, 1))
    return p


def pack_params(p):
    """One-time host-side packing of ~20 small tensors into 4 lane-dense slabs.

    Weight slabs are stored bf16 (native MXU operand dtype on v5e/v6e/v7x);
    biases / critic vectors stay f32.
    """
    f32 = jnp.float32
    bf16 = jnp.bfloat16
    F, D = p["w_proj"].shape
    H = p["w_h1"].shape[0]
    S = p["w_c_ctx"].shape[1]

    def ifgo_to_ifog(w):  # reorder LSTM gate columns [i|f|g|o] -> [i|f|o|g]
        i, f, g, o = jnp.split(w, 4, axis=-1)
        return jnp.concatenate([i, f, o, g], axis=-1)

    # LSTM gate slab rows ordered [pre | h0 | img | ctx] so the matmul splits into
    # an attention-independent half A and a dependent half B (accumulated in-kernel).
    w_lstm = ifgo_to_ifog(jnp.concatenate(
        [p["w_ih_pre"], p["w_hh"], p["w_ih_img"], p["w_ih_ctx"]], axis=0))
    b_gates = ifgo_to_ifog(p["b_gates"])

    # Block A (rows 0:H): every linear with h0 as LHS -> outputs [h1p | h0p | h2h].
    w_h0_fused = jnp.concatenate([p["w_h1"], p["w_h0"], p["w_h2_h"]], axis=1)  # (H, 2H+D)
    # Block B (rows H:): logit_fc ([wctx|h1]->D) + h2_fc_lstm img-half (wimg->H),
    # block-diagonal so one matmul produces [h_tilde | img2h].
    zHH = jnp.zeros((H, H), f32)
    zDD = jnp.zeros((D, D), f32)
    w_logit_h2 = jnp.concatenate([
        jnp.concatenate([p["w_logit_ctx"], zHH], axis=1),
        jnp.concatenate([p["w_logit_h"], zHH], axis=1),
        jnp.concatenate([zDD, p["w_h2_img"]], axis=1)], axis=0)   # (2H+D, D+H)
    misc_w = 2 * H + D
    w_logit_h2 = jnp.pad(w_logit_h2, ((0, 0), (0, misc_w - (D + H))))
    w_misc = jnp.concatenate([w_h0_fused, w_logit_h2], axis=0)    # (3H+D, 2H+D)

    # Bias / small-vector slab: one row per consumer, padded to a common lane width.
    vec_w = max(D, 2 * H + D, 4 * H, S + H + 1)
    vec_w = ((vec_w + 127) // 128) * 128

    def row(parts):
        v = jnp.concatenate([jnp.asarray(x, f32).reshape(-1) for x in parts])
        return jnp.pad(v, (0, vec_w - v.shape[0]))[None, :]

    vec = jnp.concatenate([
        row([p["b_proj"]]),                              # row 0
        row([p["b_h1"], p["b_h0"], p["b_h2"]]),          # row 1 (matches w_h0_fused cols)
        row([b_gates]),                                  # row 2 ([i|f|o|g] order)
        row([p["b_logit"]]),                             # row 3
        row([p["w_c_ctx"], p["w_c_h"], p["b_c"]]),       # row 4 (critic)
    ], axis=0)                                           # (5, vec_w)

    return {"w_proj": jnp.asarray(p["w_proj"], bf16),
            "w_misc": jnp.asarray(w_misc, bf16),
            "w_lstm": jnp.asarray(w_lstm, bf16),
            "vec": vec}


# --------------------------------------------------------------------------- #
# Forward wrapper
# --------------------------------------------------------------------------- #
@functools.partial(jax.jit, static_argnames=("max_navigable",))
def _forward_impl(packed, navigable_feat, pre_feat, h_0, c_0, ctx, ctx_mask,
                  index_length, max_navigable):
    f32 = jnp.float32
    B, N, F = navigable_feat.shape
    _, S, H = ctx.shape
    assert N == max_navigable

    navigable_mask = (jnp.arange(max_navigable, dtype=jnp.int32)[None, :]
                      < index_length[:, None]).astype(f32)              # (B, N)
    pe = positional_encoding(S, H)                                      # numpy const
    pos_ctx = (ctx + pe[None, :, :]).astype(f32)                        # (B, S, H)

    slot_w = ((max(H, N, S, 1) + 127) // 128) * 128
    out_w = 7 * slot_w

    bt = 8 if B % 8 == 0 else B    # batch tile = one f32 sublane group
    grid = (B // bt,)

    def btile3(d1, d2):
        return pl.BlockSpec((bt, d1, d2), lambda b: (b, 0, 0))

    def btile2(d1):
        return pl.BlockSpec((bt, d1), lambda b: (b, 0))

    def whole(arr):  # weight slab: constant index map -> fetched once, VMEM-resident
        return pl.BlockSpec(arr.shape, lambda b, _nd=arr.ndim: (0,) * _nd)

    out = pl.pallas_call(
        self_monitoring_kernel,
        out_shape=jax.ShapeDtypeStruct((B, out_w), f32),
        grid_spec=pltpu.PrefetchScalarGridSpec(
            num_scalar_prefetch=0,
            grid=grid,
            in_specs=[
                btile3(N, F),              # navigable_feat
                btile2(F),                 # pre_feat
                btile3(S, H),              # positioned ctx
                btile2(H),                 # h_0
                btile2(H),                 # c_0
                btile2(N),                 # navigable_mask
                btile2(S),                 # ctx_mask
                whole(packed["w_proj"]),
                whole(packed["w_misc"]),
                whole(packed["w_lstm"]),
                whole(packed["vec"]),
            ],
            out_specs=pl.BlockSpec((bt, out_w), lambda b: (b, 0)),
        ),
        compiler_params=pltpu.CompilerParams(
            dimension_semantics=("parallel",)),
    )(navigable_feat.astype(f32), pre_feat.astype(f32), pos_ctx,
      h_0.astype(f32), c_0.astype(f32), navigable_mask, ctx_mask.astype(f32),
      packed["w_proj"], packed["w_misc"], packed["w_lstm"], packed["vec"])

    h_1          = out[:, 0 * slot_w:0 * slot_w + H]
    c_1          = out[:, 1 * slot_w:1 * slot_w + H]
    weighted_ctx = out[:, 2 * slot_w:2 * slot_w + H]
    img_attn     = out[:, 3 * slot_w:3 * slot_w + N]
    ctx_attn     = out[:, 4 * slot_w:4 * slot_w + S]
    logit        = out[:, 5 * slot_w:5 * slot_w + N]
    value        = out[:, 6 * slot_w:6 * slot_w + 1]
    return h_1, c_1, weighted_ctx, img_attn, ctx_attn, logit, value, navigable_mask


def self_monitoring_forward(packed_params, img_feat, navigable_feat, pre_feat,
                            question, h_0, c_0, ctx, pre_ctx_attend,
                            navigable_index, ctx_mask, max_navigable):
    # img_feat / question / pre_ctx_attend are unused by the compute (as in PyTorch).
    del img_feat, question, pre_ctx_attend
    index_length = jnp.asarray([len(ix) + 1 for ix in navigable_index], jnp.int32)
    return _forward_impl(packed_params, navigable_feat, pre_feat, h_0, c_0, ctx,
                         ctx_mask, index_length, max_navigable)


# --------------------------------------------------------------------------- #
# Pure-JAX f32 reference (mirrors the PyTorch forward), for a correctness check
# --------------------------------------------------------------------------- #
def reference_forward(p, navigable_feat, pre_feat, h_0, c_0, ctx, ctx_mask,
                      navigable_mask):
    B, N, F = navigable_feat.shape
    _, S, H = ctx.shape
    D = p["w_proj"].shape[1]
    relu = lambda x: jnp.maximum(x, 0.0)
    proj_nav = relu(navigable_feat.reshape(B * N, F) @ p["w_proj"] + p["b_proj"])
    proj_nav = proj_nav.reshape(B, N, D) * navigable_mask[:, :, None]
    proj_pre = relu(pre_feat @ p["w_proj"] + p["b_proj"])
    pos_ctx = ctx + positional_encoding(S, H)[None, :, :]

    def soft_attn(h, context, mask):
        scores = jnp.einsum("bsd,bd->bs", context, h)
        scores = jnp.where(mask == 0, -jnp.inf, scores)
        attn = jax.nn.softmax(scores, axis=1)
        return jnp.einsum("bs,bsd->bd", attn, context), attn

    h1p = h_0 @ p["w_h1"] + p["b_h1"]
    h0p = h_0 @ p["w_h0"] + p["b_h0"]
    weighted_ctx, ctx_attn = soft_attn(h1p, pos_ctx, ctx_mask)
    weighted_img, img_attn = soft_attn(h0p, proj_nav, navigable_mask)
    gates = (proj_pre @ p["w_ih_pre"] + weighted_img @ p["w_ih_img"]
             + weighted_ctx @ p["w_ih_ctx"] + h_0 @ p["w_hh"] + p["b_gates"])
    i_g = jax.nn.sigmoid(gates[:, :H]); f_g = jax.nn.sigmoid(gates[:, H:2 * H])
    g_g = jnp.tanh(gates[:, 2 * H:3 * H]); o_g = jax.nn.sigmoid(gates[:, 3 * H:])
    c_1 = f_g * c_0 + i_g * g_g
    h_1 = o_g * jnp.tanh(c_1)
    h_tilde = weighted_ctx @ p["w_logit_ctx"] + h_1 @ p["w_logit_h"] + p["b_logit"]
    logit = jnp.einsum("bnd,bd->bn", proj_nav, h_tilde)
    cvi = h_0 @ p["w_h2_h"] + weighted_img @ p["w_h2_img"] + p["b_h2"]
    h_1_value = jax.nn.sigmoid(cvi) * jnp.tanh(c_1)
    value = jnp.tanh(jnp.sum(ctx_attn * p["w_c_ctx"], axis=1, keepdims=True)
                     + jnp.sum(h_1_value * p["w_c_h"], axis=1, keepdims=True)
                     + p["b_c"])
    return h_1, c_1, weighted_ctx, img_attn, ctx_attn, logit, value


# --------------------------------------------------------------------------- #
if __name__ == "__main__":
    # Batch is a multiple of 8 (full f32 sublane group / amortizes launch cost).
    B = 8                 # batch (environments)
    NUM_IMGS = 36         # img_feat panorama slots (unused by compute)
    F = 128               # img_feat_input_dim
    D = 32                # img_fc_dim[-1]
    H = 32                # rnn_hidden_size
    S = 8                 # seq_len == max_len (critic requires this)
    MAX_NAV = 16          # max_navigable

    key = jax.random.PRNGKey(0)
    kp, *kd = jax.random.split(key, 10)
    params = init_params(kp, F, D, H, S)
    packed = pack_params(params)          # one-time weight packing (4 slabs, bf16)

    img_feat = jax.random.normal(kd[0], (B, NUM_IMGS, F), jnp.float32)
    navigable_feat = jax.random.normal(kd[1], (B, MAX_NAV, F), jnp.float32)
    pre_feat = jax.random.normal(kd[2], (B, F), jnp.float32)
    question = jax.random.normal(kd[3], (B, H), jnp.float32)       # unused
    h_0 = jax.random.normal(kd[4], (B, H), jnp.float32)
    c_0 = jax.random.normal(kd[5], (B, H), jnp.float32)
    ctx = jax.random.normal(kd[6], (B, S, H), jnp.float32)
    pre_ctx_attend = jax.random.normal(kd[7], (B, H), jnp.float32)  # unused

    navigable_index = [[0, 1, 2],
                       [0, 1, 2, 3, 4, 5],
                       [0],
                       [0, 1],
                       [0, 1, 2, 3],
                       [0, 1, 2, 3, 4, 5, 6, 7],
                       [0, 1, 2, 3, 4, 5, 6, 7, 8, 9],
                       [0, 1, 2, 3, 4, 5, 6, 7, 8, 9, 10, 11, 12, 13, 14]]
    ctx_lens = [6, 8, 4, 8, 5, 7, 8, 3]
    ctx_mask = create_mask(B, S, ctx_lens)

    outs = self_monitoring_forward(
        packed, img_feat, navigable_feat, pre_feat, question,
        h_0, c_0, ctx, pre_ctx_attend, navigable_index, ctx_mask, MAX_NAV)
    jax.block_until_ready(outs)

    # Correctness check against a pure-f32 JAX reference of the PyTorch forward.
    # Tolerance is widened vs. a pure-f32 kernel because matmul operands are bf16
    # (MXU-native); element-wise math stays f32.
    nav_mask = outs[-1]
    ref = reference_forward(params, navigable_feat, pre_feat, h_0, c_0, ctx,
                            ctx_mask, nav_mask)
    names = ["h_1", "c_1", "weighted_ctx", "img_attn", "ctx_attn", "logit", "value"]
    for name, got, want in zip(names, outs[:7], ref):
        np.testing.assert_allclose(np.asarray(got), np.asarray(want),
                                   rtol=2e-2, atol=2e-2, err_msg=name)

    print("KERNEL_OK")
</pallas_src>

<mosaic_0001>
module attributes {stable_mosaic.version = 11 : i64} {
  func.func @self_monitoring_kernel(%arg0: i32, %arg1: memref<8x16x128xf32, #tpu.memory_space<vmem>>, %arg2: memref<8x128xf32, #tpu.memory_space<vmem>>, %arg3: memref<8x8x32xf32, #tpu.memory_space<vmem>>, %arg4: memref<8x32xf32, #tpu.memory_space<vmem>>, %arg5: memref<8x32xf32, #tpu.memory_space<vmem>>, %arg6: memref<8x16xf32, #tpu.memory_space<vmem>>, %arg7: memref<8x8xf32, #tpu.memory_space<vmem>>, %arg8: memref<128x32xbf16, #tpu.memory_space<vmem>>, %arg9: memref<128x96xbf16, #tpu.memory_space<vmem>>, %arg10: memref<128x128xbf16, #tpu.memory_space<vmem>>, %arg11: memref<5x128xf32, #tpu.memory_space<vmem>>, %arg12: memref<8x896xf32, #tpu.memory_space<vmem>>) attributes {dimension_semantics = [#tpu.dimension_semantics<parallel>], iteration_bounds = array<i64: 1>, scalar_prefetch = 0 : i64, scratch_operands = 0 : i64, tpu.core_type = #tpu.core_type<tc>, window_params = [{transform_indices = @transform_0, window_bounds = array<i64: 8, 16, 128>}, {transform_indices = @transform_1, window_bounds = array<i64: 8, 128>}, {transform_indices = @transform_2, window_bounds = array<i64: 8, 8, 32>}, {transform_indices = @transform_3, window_bounds = array<i64: 8, 32>}, {transform_indices = @transform_4, window_bounds = array<i64: 8, 32>}, {transform_indices = @transform_5, window_bounds = array<i64: 8, 16>}, {transform_indices = @transform_6, window_bounds = array<i64: 8, 8>}, {pipeline_mode = #tpu.pipeline_mode<synchronous>, transform_indices = @transform_7, window_bounds = array<i64: 128, 32>}, {pipeline_mode = #tpu.pipeline_mode<synchronous>, transform_indices = @transform_8, window_bounds = array<i64: 128, 96>}, {pipeline_mode = #tpu.pipeline_mode<synchronous>, transform_indices = @transform_9, window_bounds = array<i64: 128, 128>}, {pipeline_mode = #tpu.pipeline_mode<synchronous>, transform_indices = @transform_10, window_bounds = array<i64: 5, 128>}, {transform_indices = @transform_11, window_bounds = array<i64: 8, 896>}]} {
    %c0 = arith.constant 0 : index
    %c0_0 = arith.constant 0 : index
    %0 = vector.load %arg4[%c0, %c0_0] : memref<8x32xf32, #tpu.memory_space<vmem>>, vector<8x32xf32>
    %c0_1 = arith.constant 0 : index
    %c0_2 = arith.constant 0 : index
    %1 = vector.load %arg5[%c0_1, %c0_2] : memref<8x32xf32, #tpu.memory_space<vmem>>, vector<8x32xf32>
    %c0_3 = arith.constant 0 : index
    %c0_4 = arith.constant 0 : index
    %2 = vector.load %arg6[%c0_3, %c0_4] : memref<8x16xf32, #tpu.memory_space<vmem>>, vector<8x16xf32>
    %c0_5 = arith.constant 0 : index
    %c0_6 = arith.constant 0 : index
    %3 = vector.load %arg7[%c0_5, %c0_6] : memref<8x8xf32, #tpu.memory_space<vmem>>, vector<8x8xf32>
    %c0_7 = arith.constant 0 : index
    %c0_8 = arith.constant 0 : index
    %4 = vector.load %arg11[%c0_7, %c0_8] : memref<5x128xf32, #tpu.memory_space<vmem>>, vector<1x32xf32>
    %c0_9 = arith.constant 0 : index
    %c0_10 = arith.constant 0 : index
    %c0_11 = arith.constant 0 : index
    %5 = vector.load %arg1[%c0_9, %c0_10, %c0_11] : memref<8x16x128xf32, #tpu.memory_space<vmem>>, vector<8x16x128xf32>
    %6 = vector.shape_cast %5 : vector<8x16x128xf32> to vector<128x128xf32>
    %7 = arith.truncf %6 : vector<128x128xf32> to vector<128x128xbf16>
    %c0_12 = arith.constant 0 : index
    %c0_13 = arith.constant 0 : index
    %8 = vector.load %arg8[%c0_12, %c0_13] : memref<128x32xbf16, #tpu.memory_space<vmem>>, vector<128x32xbf16>
    %cst = arith.constant dense<0.000000e+00> : vector<128x32xf32>
    %9 = tpu.matmul %7, %8, %cst {dimension_numbers = #tpu.dot_dimension_numbers<[1], [0], [0], [1], [0, 0, 1, 1], [], []>} : vector<128x128xbf16>, vector<128x32xbf16>, vector<128x32xf32> -> vector<128x32xf32>
    %10 = vector.broadcast %4 : vector<1x32xf32> to vector<128x32xf32>
    %11 = arith.addf %9, %10 : vector<128x32xf32>
    %cst_14 = arith.constant 0.000000e+00 : f32
    %12 = vector.broadcast %cst_14 : f32 to vector<128x32xf32>
    %13 = arith.maximumf %11, %12 : vector<128x32xf32>
    %14 = vector.shape_cast %13 : vector<128x32xf32> to vector<8x16x32xf32>
    %15 = vector.shape_cast %2 : vector<8x16xf32> to vector<8x16x1xf32>
    %16 = vector.broadcast %15 : vector<8x16x1xf32> to vector<8x16x32xf32>
    %17 = arith.mulf %14, %16 : vector<8x16x32xf32>
    %c0_15 = arith.constant 0 : index
    %c0_16 = arith.constant 0 : index
    %18 = vector.load %arg2[%c0_15, %c0_16] : memref<8x128xf32, #tpu.memory_space<vmem>>, vector<8x128xf32>
    %19 = arith.truncf %18 : vector<8x128xf32> to vector<8x128xbf16>
    %c0_17 = arith.constant 0 : index
    %c0_18 = arith.constant 0 : index
    %20 = vector.load %arg8[%c0_17, %c0_18] : memref<128x32xbf16, #tpu.memory_space<vmem>>, vector<128x32xbf16>
    %cst_19 = arith.constant dense<0.000000e+00> : vector<8x32xf32>
    %21 = tpu.matmul %19, %20, %cst_19 {dimension_numbers = #tpu.dot_dimension_numbers<[1], [0], [0], [1], [0, 0, 1, 1], [], []>} : vector<8x128xbf16>, vector<128x32xbf16>, vector<8x32xf32> -> vector<8x32xf32>
    %22 = vector.broadcast %4 : vector<1x32xf32> to vector<8x32xf32>
    %23 = arith.addf %21, %22 : vector<8x32xf32>
    %cst_20 = arith.constant 0.000000e+00 : f32
    %24 = vector.broadcast %cst_20 : f32 to vector<8x32xf32>
    %25 = arith.maximumf %23, %24 : vector<8x32xf32>
    %26 = arith.truncf %0 : vector<8x32xf32> to vector<8x32xbf16>
    %c0_21 = arith.constant 0 : index
    %c0_22 = arith.constant 0 : index
    %27 = vector.load %arg9[%c0_21, %c0_22] : memref<128x96xbf16, #tpu.memory_space<vmem>>, vector<32x96xbf16>
    %cst_23 = arith.constant dense<0.000000e+00> : vector<8x96xf32>
    %28 = tpu.matmul %26, %27, %cst_23 {dimension_numbers = #tpu.dot_dimension_numbers<[1], [0], [0], [1], [0, 0, 1, 1], [], []>} : vector<8x32xbf16>, vector<32x96xbf16>, vector<8x96xf32> -> vector<8x96xf32>
    %c1 = arith.constant 1 : index
    %c0_24 = arith.constant 0 : index
    %29 = vector.load %arg11[%c1, %c0_24] : memref<5x128xf32, #tpu.memory_space<vmem>>, vector<1x96xf32>
    %30 = vector.broadcast %29 : vector<1x96xf32> to vector<8x96xf32>
    %31 = arith.addf %28, %30 : vector<8x96xf32>
    %32 = vector.extract_strided_slice %31 {offsets = [0, 0], sizes = [8, 32], strides = [1, 1]} : vector<8x96xf32> to vector<8x32xf32>
    %33 = vector.extract_strided_slice %31 {offsets = [0, 32], sizes = [8, 32], strides = [1, 1]} : vector<8x96xf32> to vector<8x32xf32>
    %34 = vector.extract_strided_slice %31 {offsets = [0, 64], sizes = [8, 32], strides = [1, 1]} : vector<8x96xf32> to vector<8x32xf32>
    %35 = tpu.concatenate %25, %0 in 1 : vector<8x32xf32>, vector<8x32xf32> -> vector<8x64xf32>
    %36 = arith.truncf %35 : vector<8x64xf32> to vector<8x64xbf16>
    %c0_25 = arith.constant 0 : index
    %c0_26 = arith.constant 0 : index
    %37 = vector.load %arg10[%c0_25, %c0_26] : memref<128x128xbf16, #tpu.memory_space<vmem>>, vector<64x128xbf16>
    %cst_27 = arith.constant dense<0.000000e+00> : vector<8x128xf32>
    %38 = tpu.matmul %36, %37, %cst_27 {dimension_numbers = #tpu.dot_dimension_numbers<[1], [0], [0], [1], [0, 0, 1, 1], [], []>} : vector<8x64xbf16>, vector<64x128xbf16>, vector<8x128xf32> -> vector<8x128xf32>
    %c2 = arith.constant 2 : index
    %c0_28 = arith.constant 0 : index
    %39 = vector.load %arg11[%c2, %c0_28] : memref<5x128xf32, #tpu.memory_space<vmem>>, vector<1x128xf32>
    %40 = vector.broadcast %39 : vector<1x128xf32> to vector<8x128xf32>
    %41 = arith.addf %38, %40 : vector<8x128xf32>
    %c0_29 = arith.constant 0 : index
    %c0_30 = arith.constant 0 : index
    %c0_31 = arith.constant 0 : index
    %42 = vector.load %arg3[%c0_29, %c0_30, %c0_31] : memref<8x8x32xf32, #tpu.memory_space<vmem>>, vector<8x8x32xf32>
    %43 = vector.shape_cast %32 : vector<8x32xf32> to vector<8x1x32xf32>
    %44 = vector.broadcast %43 : vector<8x1x32xf32> to vector<8x8x32xf32>
    %45 = arith.mulf %42, %44 : vector<8x8x32xf32>
    %cst_32 = arith.constant dense<0.000000e+00> : vector<8x8xf32>
    %46 = vector.multi_reduction <add>, %45, %cst_32 [2] : vector<8x8x32xf32> to vector<8x8xf32>
    %cst_33 = arith.constant 0.000000e+00 : f32
    %47 = vector.broadcast %cst_33 : f32 to vector<8x8xf32>
    %48 = arith.cmpf oeq, %3, %47 : vector<8x8xf32>
    %cst_34 = arith.constant -1.000000e+30 : f32
    %49 = vector.broadcast %cst_34 : f32 to vector<8x8xf32>
    %50 = arith.select %48, %49, %46 : vector<8x8xi1>, vector<8x8xf32>
    %cst_35 = arith.constant dense<0xFF800000> : vector<8xf32>
    %51 = vector.multi_reduction <maximumf>, %50, %cst_35 [1] : vector<8x8xf32> to vector<8xf32>
    %52 = vector.shape_cast %51 : vector<8xf32> to vector<8x1xf32>
    %53 = vector.broadcast %52 : vector<8x1xf32> to vector<8x8xf32>
    %54 = arith.subf %50, %53 : vector<8x8xf32>
    %55 = math.exp %54 : vector<8x8xf32>
    %cst_36 = arith.constant dense<0.000000e+00> : vector<8xf32>
    %56 = vector.multi_reduction <add>, %55, %cst_36 [1] : vector<8x8xf32> to vector<8xf32>
    %57 = vector.shape_cast %56 : vector<8xf32> to vector<8x1xf32>
    %58 = vector.broadcast %57 : vector<8x1xf32> to vector<8x8xf32>
    %59 = arith.divf %55, %58 : vector<8x8xf32>
    %60 = vector.shape_cast %59 : vector<8x8xf32> to vector<8x8x1xf32>
    %61 = vector.broadcast %60 : vector<8x8x1xf32> to vector<8x8x32xf32>
    %62 = arith.mulf %61, %42 : vector<8x8x32xf32>
    %cst_37 = arith.constant dense<0.000000e+00> : vector<8x32xf32>
    %63 = vector.multi_reduction <add>, %62, %cst_37 [1] : vector<8x8x32xf32> to vector<8x32xf32>
    %64 = vector.shape_cast %33 : vector<8x32xf32> to vector<8x1x32xf32>
    %65 = vector.broadcast %64 : vector<8x1x32xf32> to vector<8x16x32xf32>
    %66 = arith.mulf %17, %65 : vector<8x16x32xf32>
    %cst_38 = arith.constant dense<0.000000e+00> : vector<8x16xf32>
    %67 = vector.multi_reduction <add>, %66, %cst_38 [2] : vector<8x16x32xf32> to vector<8x16xf32>
    %cst_39 = arith.constant 0.000000e+00 : f32
    %68 = vector.broadcast %cst_39 : f32 to vector<8x16xf32>
    %69 = arith.cmpf oeq, %2, %68 : vector<8x16xf32>
    %cst_40 = arith.constant -1.000000e+30 : f32
    %70 = vector.broadcast %cst_40 : f32 to vector<8x16xf32>
    %71 = arith.select %69, %70, %67 : vector<8x16xi1>, vector<8x16xf32>
    %cst_41 = arith.constant dense<0xFF800000> : vector<8xf32>
    %72 = vector.multi_reduction <maximumf>, %71, %cst_41 [1] : vector<8x16xf32> to vector<8xf32>
    %73 = vector.shape_cast %72 : vector<8xf32> to vector<8x1xf32>
    %74 = vector.broadcast %73 : vector<8x1xf32> to vector<8x16xf32>
    %75 = arith.subf %71, %74 : vector<8x16xf32>
    %76 = math.exp %75 : vector<8x16xf32>
    %cst_42 = arith.constant dense<0.000000e+00> : vector<8xf32>
    %77 = vector.multi_reduction <add>, %76, %cst_42 [1] : vector<8x16xf32> to vector<8xf32>
    %78 = vector.shape_cast %77 : vector<8xf32> to vector<8x1xf32>
    %79 = vector.broadcast %78 : vector<8x1xf32> to vector<8x16xf32>
    %80 = arith.divf %76, %79 : vector<8x16xf32>
    %81 = vector.shape_cast %80 : vector<8x16xf32> to vector<8x16x1xf32>
    %82 = vector.broadcast %81 : vector<8x16x1xf32> to vector<8x16x32xf32>
    %83 = arith.mulf %82, %17 : vector<8x16x32xf32>
    %cst_43 = arith.constant dense<0.000000e+00> : vector<8x32xf32>
    %84 = vector.multi_reduction <add>, %83, %cst_43 [1] : vector<8x16x32xf32> to vector<8x32xf32>
    %85 = tpu.concatenate %84, %63 in 1 : vector<8x32xf32>, vector<8x32xf32> -> vector<8x64xf32>
    %86 = arith.truncf %85 : vector<8x64xf32> to vector<8x64xbf16>
    %c64 = arith.constant 64 : index
    %c0_44 = arith.constant 0 : index
    %87 = vector.load %arg10[%c64, %c0_44] : memref<128x128xbf16, #tpu.memory_space<vmem>>, vector<64x128xbf16>
    %cst_45 = arith.constant dense<0.000000e+00> : vector<8x128xf32>
    %88 = tpu.matmul %86, %87, %cst_45 {dimension_numbers = #tpu.dot_dimension_numbers<[1], [0], [0], [1], [0, 0, 1, 1], [], []>} : vector<8x64xbf16>, vector<64x128xbf16>, vector<8x128xf32> -> vector<8x128xf32>
    %89 = arith.addf %41, %88 : vector<8x128xf32>
    %90 = vector.extract_strided_slice %89 {offsets = [0, 0], sizes = [8, 96], strides = [1, 1]} : vector<8x128xf32> to vector<8x96xf32>
    %91 = arith.negf %90 : vector<8x96xf32>
    %92 = math.exp %91 : vector<8x96xf32>
    %cst_46 = arith.constant 1.000000e+00 : f32
    %93 = vector.broadcast %cst_46 : f32 to vector<8x96xf32>
    %94 = arith.addf %93, %92 : vector<8x96xf32>
    %95 = arith.divf %93, %94 : vector<8x96xf32>
    %96 = vector.extract_strided_slice %95 {offsets = [0, 0], sizes = [8, 32], strides = [1, 1]} : vector<8x96xf32> to vector<8x32xf32>
    %97 = vector.extract_strided_slice %95 {offsets = [0, 32], sizes = [8, 32], strides = [1, 1]} : vector<8x96xf32> to vector<8x32xf32>
    %98 = vector.extract_strided_slice %95 {offsets = [0, 64], sizes = [8, 32], strides = [1, 1]} : vector<8x96xf32> to vector<8x32xf32>
    %99 = vector.extract_strided_slice %89 {offsets = [0, 96], sizes = [8, 32], strides = [1, 1]} : vector<8x128xf32> to vector<8x32xf32>
    %100 = math.tanh %99 : vector<8x32xf32>
    %101 = arith.mulf %97, %1 : vector<8x32xf32>
    %102 = arith.mulf %96, %100 : vector<8x32xf32>
    %103 = arith.addf %101, %102 : vector<8x32xf32>
    %104 = math.tanh %103 : vector<8x32xf32>
    %105 = arith.mulf %98, %104 : vector<8x32xf32>
    %106 = tpu.concatenate %63, %105, %84 in 1 : vector<8x32xf32>, vector<8x32xf32>, vector<8x32xf32> -> vector<8x96xf32>
    %107 = arith.truncf %106 : vector<8x96xf32> to vector<8x96xbf16>
    %c32 = arith.constant 32 : index
    %c0_47 = arith.constant 0 : index
    %108 = vector.load %arg9[%c32, %c0_47] : memref<128x96xbf16, #tpu.memory_space<vmem>>, vector<96x96xbf16>
    %cst_48 = arith.constant dense<0.000000e+00> : vector<8x96xf32>
    %109 = tpu.matmul %107, %108, %cst_48 {dimension_numbers = #tpu.dot_dimension_numbers<[1], [0], [0], [1], [0, 0, 1, 1], [], []>} : vector<8x96xbf16>, vector<96x96xbf16>, vector<8x96xf32> -> vector<8x96xf32>
    %110 = vector.extract_strided_slice %109 {offsets = [0, 0], sizes = [8, 32], strides = [1, 1]} : vector<8x96xf32> to vector<8x32xf32>
    %c3 = arith.constant 3 : index
    %c0_49 = arith.constant 0 : index
    %111 = vector.load %arg11[%c3, %c0_49] : memref<5x128xf32, #tpu.memory_space<vmem>>, vector<1x32xf32>
    %112 = vector.broadcast %111 : vector<1x32xf32> to vector<8x32xf32>
    %113 = arith.addf %110, %112 : vector<8x32xf32>
    %114 = vector.extract_strided_slice %109 {offsets = [0, 32], sizes = [8, 32], strides = [1, 1]} : vector<8x96xf32> to vector<8x32xf32>
    %115 = vector.shape_cast %113 : vector<8x32xf32> to vector<8x1x32xf32>
    %116 = vector.broadcast %115 : vector<8x1x32xf32> to vector<8x16x32xf32>
    %117 = arith.mulf %17, %116 : vector<8x16x32xf32>
    %cst_50 = arith.constant dense<0.000000e+00> : vector<8x16xf32>
    %118 = vector.multi_reduction <add>, %117, %cst_50 [2] : vector<8x16x32xf32> to vector<8x16xf32>
    %119 = arith.addf %34, %114 : vector<8x32xf32>
    %120 = arith.negf %119 : vector<8x32xf32>
    %121 = math.exp %120 : vector<8x32xf32>
    %cst_51 = arith.constant 1.000000e+00 : f32
    %122 = vector.broadcast %cst_51 : f32 to vector<8x32xf32>
    %123 = arith.addf %122, %121 : vector<8x32xf32>
    %124 = arith.divf %122, %123 : vector<8x32xf32>
    %125 = math.tanh %103 : vector<8x32xf32>
    %126 = arith.mulf %124, %125 : vector<8x32xf32>
    %c4 = arith.constant 4 : index
    %c0_52 = arith.constant 0 : index
    %127 = vector.load %arg11[%c4, %c0_52] : memref<5x128xf32, #tpu.memory_space<vmem>>, vector<1x8xf32>
    %c4_53 = arith.constant 4 : index
    %c8 = arith.constant 8 : index
    %128 = vector.load %arg11[%c4_53, %c8] : memref<5x128xf32, #tpu.memory_space<vmem>>, vector<1x32xf32>
    %c4_54 = arith.constant 4 : index
    %c40 = arith.constant 40 : index
    %129 = vector.load %arg11[%c4_54, %c40] : memref<5x128xf32, #tpu.memory_space<vmem>>, vector<1x1xf32>
    %130 = vector.broadcast %127 : vector<1x8xf32> to vector<8x8xf32>
    %131 = arith.mulf %59, %130 : vector<8x8xf32>
    %cst_55 = arith.constant dense<0.000000e+00> : vector<8xf32>
    %132 = vector.multi_reduction <add>, %131, %cst_55 [1] : vector<8x8xf32> to vector<8xf32>
    %133 = vector.shape_cast %132 : vector<8xf32> to vector<8x1xf32>
    %134 = vector.broadcast %128 : vector<1x32xf32> to vector<8x32xf32>
    %135 = arith.mulf %126, %134 : vector<8x32xf32>
    %cst_56 = arith.constant dense<0.000000e+00> : vector<8xf32>
    %136 = vector.multi_reduction <add>, %135, %cst_56 [1] : vector<8x32xf32> to vector<8xf32>
    %137 = vector.shape_cast %136 : vector<8xf32> to vector<8x1xf32>
    %138 = arith.addf %133, %137 : vector<8x1xf32>
    %139 = vector.broadcast %129 : vector<1x1xf32> to vector<8x1xf32>
    %140 = arith.addf %138, %139 : vector<8x1xf32>
    %141 = math.tanh %140 : vector<8x1xf32>
    %cst_57 = arith.constant 0.000000e+00 : f32
    %142 = vector.broadcast %cst_57 : f32 to vector<8x96xf32>
    %143 = tpu.concatenate %105, %142 in 1 : vector<8x32xf32>, vector<8x96xf32> -> vector<8x128xf32>
    %cst_58 = arith.constant 0.000000e+00 : f32
    %144 = vector.broadcast %cst_58 : f32 to vector<8x96xf32>
    %145 = tpu.concatenate %103, %144 in 1 : vector<8x32xf32>, vector<8x96xf32> -> vector<8x128xf32>
    %cst_59 = arith.constant 0.000000e+00 : f32
    %146 = vector.broadcast %cst_59 : f32 to vector<8x96xf32>
    %147 = tpu.concatenate %63, %146 in 1 : vector<8x32xf32>, vector<8x96xf32> -> vector<8x128xf32>
    %cst_60 = arith.constant 0.000000e+00 : f32
    %148 = vector.broadcast %cst_60 : f32 to vector<8x112xf32>
    %149 = tpu.concatenate %80, %148 in 1 : vector<8x16xf32>, vector<8x112xf32> -> vector<8x128xf32>
    %cst_61 = arith.constant 0.000000e+00 : f32
    %150 = vector.broadcast %cst_61 : f32 to vector<8x120xf32>
    %151 = tpu.concatenate %59, %150 in 1 : vector<8x8xf32>, vector<8x120xf32> -> vector<8x128xf32>
    %cst_62 = arith.constant 0.000000e+00 : f32
    %152 = vector.broadcast %cst_62 : f32 to vector<8x112xf32>
    %153 = tpu.concatenate %118, %152 in 1 : vector<8x16xf32>, vector<8x112xf32> -> vector<8x128xf32>
    %cst_63 = arith.constant 0.000000e+00 : f32
    %154 = vector.broadcast %cst_63 : f32 to vector<8x127xf32>
    %155 = tpu.concatenate %141, %154 in 1 : vector<8x1xf32>, vector<8x127xf32> -> vector<8x128xf32>
    %156 = tpu.concatenate %143, %145, %147, %149, %151, %153, %155 in 1 : vector<8x128xf32>, vector<8x128xf32>, vector<8x128xf32>, vector<8x128xf32>, vector<8x128xf32>, vector<8x128xf32>, vector<8x128xf32> -> vector<8x896xf32>
    %c0_64 = arith.constant 0 : index
    %c0_65 = arith.constant 0 : index
    %157 = vector.load %arg12[%c0_64, %c0_65] : memref<8x896xf32, #tpu.memory_space<vmem>>, vector<8x896xf32>
    tpu.vector_store %arg12[%c0_64, %c0_65], %156 {strides = array<i32>} : memref<8x896xf32, #tpu.memory_space<vmem>>, vector<8x896xf32>,
    return
  }
  func.func @transform_0(%arg0: i32) -> (i32, i32, i32) {
    %c0_i32 = arith.constant 0 : i32
    %c0_i32_0 = arith.constant 0 : i32
    %c0_i32_1 = arith.constant 0 : i32
    return %arg0, %c0_i32, %c0_i32_0 : i32, i32, i32
  }
  func.func @transform_1(%arg0: i32) -> (i32, i32) {
    %c0_i32 = arith.constant 0 : i32
    %c0_i32_0 = arith.constant 0 : i32
    return %arg0, %c0_i32 : i32, i32
  }
  func.func @transform_2(%arg0: i32) -> (i32, i32, i32) {
    %c0_i32 = arith.constant 0 : i32
    %c0_i32_0 = arith.constant 0 : i32
    %c0_i32_1 = arith.constant 0 : i32
    return %arg0, %c0_i32, %c0_i32_0 : i32, i32, i32
  }
  func.func @transform_3(%arg0: i32) -> (i32, i32) {
    %c0_i32 = arith.constant 0 : i32
    %c0_i32_0 = arith.constant 0 : i32
    return %arg0, %c0_i32 : i32, i32
  }
  func.func @transform_4(%arg0: i32) -> (i32, i32) {
    %c0_i32 = arith.constant 0 : i32
    %c0_i32_0 = arith.constant 0 : i32
    return %arg0, %c0_i32 : i32, i32
  }
  func.func @transform_5(%arg0: i32) -> (i32, i32) {
    %c0_i32 = arith.constant 0 : i32
    %c0_i32_0 = arith.constant 0 : i32
    return %arg0, %c0_i32 : i32, i32
  }
  func.func @transform_6(%arg0: i32) -> (i32, i32) {
    %c0_i32 = arith.constant 0 : i32
    %c0_i32_0 = arith.constant 0 : i32
    return %arg0, %c0_i32 : i32, i32
  }
  func.func @transform_7(%arg0: i32) -> (i32, i32) {
    %c0_i32 = arith.constant 0 : i32
    %c0_i32_0 = arith.constant 0 : i32
    %c0_i32_1 = arith.constant 0 : i32
    return %c0_i32, %c0_i32_0 : i32, i32
  }
  func.func @transform_8(%arg0: i32) -> (i32, i32) {
    %c0_i32 = arith.constant 0 : i32
    %c0_i32_0 = arith.constant 0 : i32
    %c0_i32_1 = arith.constant 0 : i32
    return %c0_i32, %c0_i32_0 : i32, i32
  }
  func.func @transform_9(%arg0: i32) -> (i32, i32) {
    %c0_i32 = arith.constant 0 : i32
    %c0_i32_0 = arith.constant 0 : i32
    %c0_i32_1 = arith.constant 0 : i32
    return %c0_i32, %c0_i32_0 : i32, i32
  }
  func.func @transform_10(%arg0: i32) -> (i32, i32) {
    %c0_i32 = arith.constant 0 : i32
    %c0_i32_0 = arith.constant 0 : i32
    %c0_i32_1 = arith.constant 0 : i32
    return %c0_i32, %c0_i32_0 : i32, i32
  }
  func.func @transform_11(%arg0: i32) -> (i32, i32) {
    %c0_i32 = arith.constant 0 : i32
    %c0_i32_0 = arith.constant 0 : i32
    return %arg0, %c0_i32 : i32, i32
  }
}

</mosaic_0001>

<bundles_post_ra>
// kernel: _forward_impl.1
= control target key start
LH: loop header
LB: loop body
LE: loop exit
PB: predicated region body
PF: predicated region fallthrough
CT: control target
= control target key end

     0   :  { %v199_v0 = vlaneseq  ;;  %vm353_vm0 = vcmask 261120   ;;  %s1642_s12 = smov 96   ;;  %vm510_vm1 = vcmask 1041409   ;;  %vm512_vm2 = vcmask 1042434   ;;  %s1643_s19 = smov 32   ;;  %s2388_s7 = inlined_call_operand.vmem [shape: bf16[128,32], index: 7, kind: input, shape index: {}]   ;;  %s2389_s5 = inlined_call_operand.vmem [shape: f32[8,16], index: 5, kind: input, shape index: {}]   ;;  %s2390_s0 = inlined_call_operand.vmem [shape: f32[8,16,128], index: 0, kind: input, shape index: {}]   ;;  %s2391_s8 = inlined_call_operand.vmem [shape: bf16[128,96], index: 8, kind: input, shape index: {}]   ;;  %s2392_s10 = inlined_call_operand.vmem [shape: f32[5,128], index: 10, kind: input, shape index: {}]   ;;  %s2393_s3 = inlined_call_operand.vmem [shape: f32[8,32], index: 3, kind: input, shape index: {}]   ;;  %s2394_s2 = inlined_call_operand.vmem [shape: f32[8,8,32], index: 2, kind: input, shape index: {}]   ;;  %s2395_s6 = inlined_call_operand.vmem [shape: f32[8,8], index: 6, kind: input, shape index: {}]   ;;  %s2396_s11 = inlined_call_operand.vmem [shape: f32[8,896], index: 11, kind: output, shape index: {}]   ;;  %s2397_s1 = inlined_call_operand.vmem [shape: f32[8,128], index: 1, kind: input, shape index: {}]   ;;  %s2398_s9 = inlined_call_operand.vmem [shape: bf16[128,128], index: 9, kind: input, shape index: {}]   ;;  %s2399_s4 = inlined_call_operand.vmem [shape: f32[8,32], index: 4, kind: input, shape index: {}]  }
   0x1   :  { %v1554_v1 = vld [vmem:[%s2388_s7 + $0x38] sm:$0xff]  ;;  %v1716_v3 = vld [vmem:[%s2388_s7 + $0x30] sm:$0xff]  ;;  %v1725_v5 = vld [vmem:[%s2389_s5] sm:$0xff]  ;;  %vm514_vm3 = vcmask 1043459   ;;  %vm516_vm4 = vcmask 1044484   ;;  %vm518_vm5 = vcmask 1045509  }
   0x2   :  { %v1711_v2 = vshrl.u32 %v199_v0, 7  ;;  %1572 = vmatpush.bf16.msra.mxu2 %v1554_v1  ;;  %133 = vmatpush.bf16.msra.mxu0 %v1554_v1  ;;  %v1552_v6 = vld [vmem:[%s2388_s7 + $0x28] sm:$0xff]  ;;  %v224_v7 = vperm.slane %v1725_v5, 2  ;;  %v198_v8 = vperm.slane %v1725_v5, 0  ;;  %v1551_v9 = vld [vmem:[%s2388_s7 + $0x20] sm:$0xff]  ;;  %v1550_v10 = vld [vmem:[%s2388_s7 + $0x18] sm:$0xff] }
   0x3   :  { %1571 = vmatpush.bf16.msra.mxu1 %v1554_v1  ;;  %v250_v11 = vperm.slane %v1725_v5, 4  ;;  %v1549_v12 = vld [vmem:[%s2388_s7 + $0x10] sm:$0xff]  ;;  %v1548_v13 = vld [vmem:[%s2388_s7 + $0x8] sm:$0xff]  ;;  %v263_v14 = vperm.slane %v1725_v5, 5  ;;  %v1547_v15 = vld [vmem:[%s2388_s7] sm:$0xff]  ;;  %v237_v23 = vperm.slane %v1725_v5, 3 }
   0x4   :  { %1594 = vset.pattern.permute.xlu2 %v1711_v2  ;;  %v1720_v4 = vadd.s32 8, %v1711_v2  ;;  %1593 = vset.pattern.permute.xlu1 %v1711_v2  ;;  %v58_v16 = vld [vmem:[%s2390_s0 + $0x70] sm:$0xff]  ;;  %v59_v17 = vld [vmem:[%s2390_s0 + $0x78] sm:$0xff]  ;;  %v1556_v18 = vld [vmem:[%s2391_s8 + $0x8] sm:$0xff]  ;;  %v276_v25 = vperm.slane %v1725_v5, 6  ;;  %v289_v26 = vperm.slane %v1725_v5, 7 }
   0x5   :  { %v44_v19 = vld [vmem:[%s2390_s0] sm:$0xff]  ;;  %v45_v20 = vld [vmem:[%s2390_s0 + $0x8] sm:$0xff]  ;;  %v67_v21 = vpack.c.bf16 %v59_v17, %v58_v16  ;;  %v46_v28 = vld [vmem:[%s2390_s0 + $0x10] sm:$0xff]  ;;  %v211_v47 = vperm.slane %v1725_v5, 1  ;;  %vm520_vm6 = vcmask 1046534   ;;  %vm522_vm7 = vcmask 1047559  }
   0x6   :  { %1592 = vset.pattern.permute.xlu0 %v1720_v4  ;;  %1574 = vmatpush.bf16.msra.mxu2 %v1716_v3  ;;  %v60_v22 = vpack.c.bf16 %v45_v20, %v44_v19  ;;  %v1555_v24 = vld [vmem:[%s2391_s8] sm:$0xff]  ;;  %v47_v29 = vld [vmem:[%s2390_s0 + $0x18] sm:$0xff]  ;;  %v53_v31 = vld [vmem:[%s2390_s0 + $0x48] sm:$0xff]  ;;  %vm526_vm9 = vcmask 64512   ;;  %vm779_vm10 = vcmask 130112   ;;  %vm759_vm11 = vcmp.eq.f32.partialorder %v1725_v5, 0.0 }
   0x7   :  { %134 = vmatpush.bf16.msra.mxu0 %v1716_v3  ;;  %1573 = vmatpush.bf16.msra.mxu1 %v1716_v3  ;;  %v39_v27 = vld [vmem:[%s2393_s3] sm:$0xff]  ;;  %v61_v33 = vpack.c.bf16 %v47_v29, %v46_v28  ;;  %v54_v35 = vld [vmem:[%s2390_s0 + $0x50] sm:$0xff]  ;;  %v55_v36 = vld [vmem:[%s2390_s0 + $0x58] sm:$0xff]  ;;  %vm811_vm12 = vcmask 130048   ;;  %s1645_s18 = smov 56  }
   0x8   :  { %v52_v30 = vld [vmem:[%s2390_s0 + $0x40] sm:$0xff]  ;;  %v334_v32 = vpack.c.bf16 %v39_v27, %v39_v27  ;;  %v49_v38 = vld [vmem:[%s2390_s0 + $0x28] sm:$0xff]  ;;  %v65_v39 = vpack.c.bf16 %v55_v36, %v54_v35  ;;  %v50_v43 = vld [vmem:[%s2390_s0 + $0x30] sm:$0xff] }
   0x9   :  { %v64_v34 = vpack.c.bf16 %v53_v31, %v52_v30  ;;  %v48_v37 = vld [vmem:[%s2390_s0 + $0x20] sm:$0xff]  ;;  %v57_v42 = vld [vmem:[%s2390_s0 + $0x68] sm:$0xff]  ;;  %v51_v44 = vld [vmem:[%s2390_s0 + $0x38] sm:$0xff] }
   0xa   :  { %1576 = vmatpush.bf16.msra.mxu2 %v1552_v6  ;;  %v62_v40 = vpack.c.bf16 %v49_v38, %v48_v37  ;;  %v56_v41 = vld [vmem:[%s2390_s0 + $0x60] sm:$0xff]  ;;  %v63_v46 = vpack.c.bf16 %v51_v44, %v50_v43  ;;  %v1875_v19 = vld [vmem:[%s2394_s2 + $0x30] sm:$0xff]  ;;  %v1880_v20 = vld [vmem:[%s2394_s2 + $0x28] sm:$0xff] }
   0xb   :  { %135 = vmatpush.bf16.msra.mxu0 %v1552_v6  ;;  %1575 = vmatpush.bf16.msra.mxu1 %v1552_v6  ;;  %v66_v45 = vpack.c.bf16 %v57_v42, %v56_v41  ;;  %v1614_v50 = vld [vmem:[%s2392_s10 + $0x1] ss:$0 sm:$0xff]  ;;  %v1891_v28 = vld [vmem:[%s2394_s2 + $0x8] sm:$0xff] }
   0xc   :  { %229 = vperm.xlu2 %1594, %v224_v7   ;;  %216 = vperm.xlu1 %1593, %v211_v47  }
   0xe   :  { %209 = vperm.xlu0 %1592, %v198_v8   ;;  %1578 = vmatpush.bf16.msra.mxu2 %v1551_v9 }
   0xf   :  { %136 = vmatpush.bf16.msra.mxu0 %v1551_v9  ;;  %1577 = vmatpush.bf16.msra.mxu1 %v1551_v9 }
  0x12   :  { %1580 = vmatpush.bf16.msra.mxu2 %v1550_v10 }
  0x13   :  { %137 = vmatpush.bf16.msra.mxu0 %v1550_v10  ;;  %1579 = vmatpush.bf16.msra.mxu1 %v1550_v10 }
  0x14   :  { %1597 = vset.pattern.permute.xlu2 %v1720_v4  ;;  %1595 = vset.pattern.permute.xlu1 %v1720_v4 }
  0x16   :  { %261 = vperm.xlu0 %1592, %v250_v11   ;;  %1582 = vmatpush.bf16.msra.mxu2 %v1549_v12 }
  0x17   :  { %138 = vmatpush.bf16.msra.mxu0 %v1549_v12  ;;  %1581 = vmatpush.bf16.msra.mxu1 %v1549_v12 }
  0x1a   :  { %1584 = vmatpush.bf16.msra.mxu2 %v1548_v13 }
  0x1b   :  { %139 = vmatpush.bf16.msra.mxu0 %v1548_v13  ;;  %1583 = vmatpush.bf16.msra.mxu1 %v1548_v13 }
  0x1c   :  { %235 = vperm.xlu2 %1597, %v224_v7   ;;  %222 = vperm.xlu1 %1595, %v211_v47  }
  0x1e   :  { %274 = vperm.xlu0 %1592, %v263_v14   ;;  %1586 = vmatpush.bf16.msra.mxu2 %v1547_v15 }
  0x1f   :  { %140 = vmatpush.bf16.msra.mxu0 %v1547_v15  ;;  %1585 = vmatpush.bf16.msra.mxu1 %v1547_v15 }
  0x21   :  { %176 = vmatmul.bf16.vlgmr.msra.gmra.mxu2 %v67_v21 }
  0x22   :  { %363 = vmatpush.bf16.msrb.mxu2 %v1556_v18  ;;  %141 = vmatmul.bf16.vlgmr.msra.gmra.mxu0 %v60_v22 }
  0x23   :  { %320 = vmatpush.bf16.msrb.mxu1 %v1554_v1 }
  0x24   :  { %248 = vperm.xlu2 %1597, %v237_v23   ;;  %161 = vmatmul.bf16.vlgmr.msra.gmra.mxu1 %v64_v34 }
  0x25   :  { %1596 = vset.pattern.permute.xlu1 %v1711_v2 }
  0x26   :  { %364 = vmatpush.bf16.msrb.mxu2 %v1555_v24  ;;  %287 = vperm.xlu0 %1592, %v276_v25  }
  0x27   :  { %321 = vmatpush.bf16.msrb.mxu1 %v1716_v3 }
  0x2b   :  { %322 = vmatpush.bf16.msrb.mxu1 %v1552_v6 }
  0x2c   :  { %1598 = vset.pattern.permute.xlu2 %v1711_v2 }
  0x2d   :  { %242 = vperm.xlu1 %1596, %v237_v23  }
  0x2e   :  { %300 = vperm.xlu0 %1592, %v289_v26  }
  0x2f   :  { %323 = vmatpush.bf16.msrb.mxu1 %v1551_v9  ;;  %v1854_v9 = vld [vmem:[%s2394_s2] sm:$0xff] }
  0x31   :  { %1485 = vmatmul.msk.bf16.vlgmr.msrb.gmra.mxu2 %vm353_vm0, %v334_v32 }
  0x32   :  { %146 = vmatmul.bf16.gmra.mxu0 %v61_v33  ;;  %v1898_v33 = vld [vmem:[%s2394_s2 + $0x20] sm:$0xff] }
  0x33   :  { %324 = vmatpush.bf16.msrb.mxu1 %v1550_v10 }
  0x34   :  { %255 = vperm.xlu2 %1598, %v250_v11   ;;  %166 = vmatmul.bf16.gmra.mxu1 %v65_v39  ;;  %v1907_v39 = vld [vmem:[%s2394_s2 + $0x38] sm:$0xff] }
  0x36   :  { %1599 = vset.pattern.permute.xlu0 %v1711_v2 }
  0x37   :  { %325 = vmatpush.bf16.msrb.mxu1 %v1549_v12  ;;  %v1861_v12 = vld [vmem:[%s2394_s2 + $0x18] sm:$0xff] }
  0x3b   :  { %326 = vmatpush.bf16.msrb.mxu1 %v1548_v13  ;;  %v1866_v13 = vld [vmem:[%s2394_s2 + $0x10] sm:$0xff] }
  0x3c   :  { %268 = vperm.xlu2 %1598, %v263_v14  }
  0x3e   :  { %203 = vperm.xlu0 %1599, %v198_v8  }
  0x3f   :  { %327 = vmatpush.bf16.msrb.mxu1 %v1547_v15 }
  0x42   :  { %151 = vmatmul.bf16.gmra.mxu0 %v62_v40 }
  0x44   :  { %281 = vperm.xlu2 %1598, %v276_v25   ;;  %171 = vmatmul.bf16.gmra.mxu1 %v66_v45 }
  0x4c   :  { %294 = vperm.xlu2 %1598, %v289_v26  }
  0x52   :  { %156 = vmatmul.bf16.gmra.mxu0 %v63_v46 }
  0x66   :  { %v230_v31 = vpop.permute.xlu2 %229 }
  0x76   :  { %v236_v38 = vpop.permute.xlu2 %235 }
  0x7e   :  { %v217_v43 = vpop.permute.xlu1 %216  ;;  %v249_v46 = vpop.permute.xlu2 %248 }
  0x80   :  { %v210_v24 = vpop.permute.xlu0 %209 }
  0x88   :  { %v1886_v27 = vpop.permute.xlu0 %261 }
  0x90   :  { %v1900_v34 = vpop.permute.xlu0 %274 }
  0x98   :  { %v1910_v41 = vpop.permute.xlu0 %287 }
  0x9f   :  { %v142_v17 = vpop.f32.mrf.mxu0 }
  0xa0   :  { %v1913_v47 = vpop.permute.xlu0 %300 }
  0xa1   :  { %v162_v45 = vpop.f32.mrf.mxu1 }
  0xa4   :  { %v1826_v48 = vpop.f32.mrf.mxu2 }
  0xa7   :  { %v144_v26 = vpop.f32.mrf.mxu0 }
  0xac   :  { %v1828_v49 = vpop.f32.mrf.mxu2 }
  0xaf   :  { %v147_v29 = vpop.f32.mrf.mxu0 }
  0xb4   :  { %v366_v51 = vpop.f32.mrf.mxu2 }
  0xb5   :  { %v1833_v52 = vadd.f32 %v1614_v50, %v366_v51  ;;  %v223_v50 = vpop.permute.xlu1 %222 }
  0xb7   :  { %v443_v53 = vperm.slane %v1833_v52, 0  ;;  %v441_v54 = vrot.slane %v1833_v52, 6  ;;  %v436_v55 = vrot.slane %v1833_v52, 1  ;;  %v442_v59 = vrot.slane %v1833_v52, 7  ;;  %v149_v36 = vpop.f32.mrf.mxu0 }
  0xb8   :  { %v437_v60 = vrot.slane %v1833_v52, 2  ;;  %v438_v63 = vrot.slane %v1833_v52, 3  ;;  %v439_v3 = vrot.slane %v1833_v52, 4  ;;  %v440_v7 = vrot.slane %v1833_v52, 5 }
  0xb9   :  { %671 = vrot.lane.b32.xlu0 %v443_v53, %s1642_s12  ;;  %v449_v56 = vperm.slane %v441_v54, 0  ;;  %v444_v57 = vperm.slane %v436_v55, 0  ;;  %v450_v61 = vperm.slane %v442_v59, 0  ;;  %v459_v10 = vmul.f32 %v443_v53, %v1854_v9  ;;  %v164_v53 = vpop.f32.mrf.mxu1  ;;  %v1918_v54 = vld [vmem:[%s2392_s10] ss:$0 sm:$0xff]  ;;  %v1920_v55 = vpop.permute.xlu2 %255 }
  0xba   :  { %v445_v62 = vperm.slane %v437_v60, 0  ;;  %v446_v1 = vperm.slane %v438_v63, 0  ;;  %v447_v6 = vperm.slane %v439_v3, 0  ;;  %v448_v8 = vperm.slane %v440_v7, 0 }
  0xbb   :  { %683 = vrot.lane.b32.xlu2 %v449_v56, %s1642_s12  ;;  %673 = vrot.lane.b32.xlu1 %v444_v57, %s1642_s12  ;;  %v467_v11 = vsel %vm353_vm0, %v459_v10, 0.0  ;;  %v465_v21 = vmul.f32 %v449_v56, %v1875_v19  ;;  %v460_v30 = vmul.f32 %v444_v57, %v1891_v28  ;;  %v466_v40 = vmul.f32 %v450_v61, %v1907_v39 }
  0xbc   :  { %v368_v58 = vpop.f32.mrf.mxu2  ;;  %v462_v14 = vmul.f32 %v446_v1, %v1861_v12  ;;  %v461_v15 = vmul.f32 %v445_v62, %v1866_v13  ;;  %v464_v22 = vmul.f32 %v448_v8, %v1880_v20  ;;  %v463_v35 = vmul.f32 %v447_v6, %v1898_v33 }
  0xbd   :  { %v485_v23 = vsel %vm353_vm0, %v465_v21, 0.0  ;;  %v470_v32 = vsel %vm353_vm0, %v460_v30, 0.0  ;;  %v488_v44 = vsel %vm353_vm0, %v466_v40, 0.0  ;;  %v143_v56 = vadd.f32 %v1918_v54, %v142_v17  ;;  %v204_v58 = vpop.permute.xlu0 %203  ;;  %v243_v59 = vpop.permute.xlu1 %242 }
  0xbe   :  { %v476_v16 = vsel %vm353_vm0, %v462_v14, 0.0  ;;  %v473_v18 = vsel %vm353_vm0, %v461_v15, 0.0  ;;  %v482_v25 = vsel %vm353_vm0, %v464_v22, 0.0  ;;  %v479_v37 = vsel %vm353_vm0, %v463_v35, 0.0 }
  0xbf   :  { %v152_v42 = vpop.f32.mrf.mxu0  ;;  %v145_v57 = vadd.f32 %v1918_v54, %v144_v26  ;;  %v148_v60 = vadd.f32 %v1918_v54, %v147_v29  ;;  %v150_v63 = vadd.f32 %v1918_v54, %v149_v36 }
  0xc0   :  { %v153_v14 = vadd.f32 %v1918_v54, %v152_v42 }
  0xc1   :  { %v184_v3 = vmax.f32 %v148_v60, 0.0  ;;  %v1930_v10 = vpop.permute.xlu2 %268 }
  0xc2   :  { %v186_v26 = vmax.f32 %v153_v14, 0.0 }
  0xc3   :  { %685 = vrot.lane.b32.xlu2 %v450_v61, %s1642_s12  ;;  %675 = vrot.lane.b32.xlu1 %v445_v62, %s1642_s12  ;;  %v182_v61 = vmax.f32 %v143_v56, 0.0  ;;  %v183_v62 = vmax.f32 %v145_v57, 0.0  ;;  %v1934_v17 = vmul.f32 %v217_v43, %v184_v3 }
  0xc4   :  { %v1945_v40 = vmul.f32 %v230_v31, %v186_v26 }
  0xc5   :  { %v1926_v7 = vmul.f32 %v210_v24, %v183_v62  ;;  %v163_v62 = vadd.f32 %v1918_v54, %v162_v45 }
  0xc7   :  { %v154_v51 = vpop.f32.mrf.mxu0 }
  0xcb   :  { %677 = vrot.lane.b32.xlu1 %v446_v1, %s1642_s12 }
  0xcf   :  { %v157_v1 = vpop.f32.mrf.mxu0 }
  0xd0   :  { %v158_v43 = vadd.f32 %v1918_v54, %v157_v1 }
  0xd2   :  { %v188_v60 = vmax.f32 %v158_v43, 0.0 }
  0xd3   :  { %679 = vrot.lane.b32.xlu1 %v447_v6, %s1642_s12  ;;  %v167_v6 = vpop.f32.mrf.mxu1 }
  0xd4   :  { %v1960_v3 = vmul.f32 %v243_v59, %v188_v60  ;;  %v168_v59 = vadd.f32 %v1918_v54, %v167_v6  ;;  %v178_v6 = vadd.f32 %v1918_v54, %v1826_v48 }
  0xd7   :  { %v159_v35 = vpop.f32.mrf.mxu0 }
  0xdb   :  { %681 = vrot.lane.b32.xlu1 %v448_v8, %s1642_s12  ;;  %v1928_v8 = vmul.f32 %v204_v58, %v182_v61 }
  0xe3   :  { %468 = vadd.xlane.f32.xlu0 %v467_v11  ;;  %v185_v11 = vmax.f32 %v150_v63, 0.0  ;;  %v165_v63 = vadd.f32 %v1918_v54, %v164_v53 }
  0xe5   :  { %v1941_v30 = vmul.f32 %v223_v50, %v185_v11 }
  0xeb   :  { %477 = vadd.xlane.f32.xlu0 %v476_v16  ;;  %v155_v16 = vadd.f32 %v1918_v54, %v154_v51  ;;  %v282_v51 = vpop.permute.xlu2 %281 }
  0xec   :  { %474 = vadd.xlane.f32.xlu2 %v473_v18 }
  0xed   :  { %v187_v29 = vmax.f32 %v155_v16, 0.0 }
  0xef   :  { %v1947_v42 = vmul.f32 %v236_v38, %v187_v29 }
  0xf3   :  { %486 = vadd.xlane.f32.xlu0 %v485_v23 }
  0xf4   :  { %483 = vadd.xlane.f32.xlu2 %v482_v25 }
 0x105   :  { %471 = vadd.xlane.f32.xlu1 %v470_v32 }
 0x10d   :  { %480 = vadd.xlane.f32.xlu1 %v479_v37  ;;  %v169_v37 = vpop.f32.mrf.mxu1 }
 0x115   :  { %489 = vadd.xlane.f32.xlu1 %v488_v44  ;;  %v160_v44 = vadd.f32 %v1918_v54, %v159_v35  ;;  %v172_v11 = vpop.f32.mrf.mxu1 }
 0x116   :  { %v173_v45 = vadd.f32 %v1918_v54, %v172_v11 }
 0x117   :  { %v189_v61 = vmax.f32 %v160_v44, 0.0  ;;  %v192_v44 = vmax.f32 %v168_v59, 0.0 }
 0x118   :  { %v194_v26 = vmax.f32 %v173_v45, 0.0  ;;  %v2013_v45 = vand.u32 127, %v199_v0 }
 0x119   :  { %v1958_v1 = vmul.f32 %v249_v46, %v189_v61 }
 0x12b   :  { %v672_v15 = vpop.permute.xlu0 %671 }
 0x12c   :  { %v695_v18 = vmul.f32 %v672_v15, %v1928_v8  ;;  %v696_v21 = vmul.f32 %v672_v15, %v1926_v7 }
 0x12d   :  { %v674_v22 = vpop.permute.xlu1 %673 }
 0x12e   :  { %v697_v23 = vmul.f32 %v674_v22, %v1934_v17  ;;  %v714_v24 = vsel %vm353_vm0, %v696_v21, 0.0  ;;  %v711_v25 = vsel %vm353_vm0, %v695_v18, 0.0  ;;  %v698_v36 = vmul.f32 %v674_v22, %v1941_v30  ;;  %v295_v18 = vpop.permute.xlu2 %294 }
 0x12f   :  { %715 = vadd.xlane.f32.xlu0 %v714_v24  ;;  %712 = vadd.xlane.f32.xlu2 %v711_v25  ;;  %v190_v21 = vmax.f32 %v163_v62, 0.0  ;;  %v191_v22 = vmax.f32 %v165_v63, 0.0  ;;  %v170_v25 = vadd.f32 %v1918_v54, %v169_v37 }
 0x130   :  { %v717_v32 = vsel %vm353_vm0, %v697_v23, 0.0  ;;  %v720_v58 = vsel %vm353_vm0, %v698_v36, 0.0  ;;  %v174_v36 = vpop.f32.mrf.mxu1 }
 0x131   :  { %718 = vadd.xlane.f32.xlu1 %v717_v32  ;;  %v1968_v46 = vmul.f32 %v1920_v55, %v190_v21  ;;  %v1971_v53 = vmul.f32 %v1886_v27, %v191_v22  ;;  %v1979_v27 = vmul.f32 %v282_v51, %v194_v26  ;;  %v175_v37 = vadd.f32 %v1918_v54, %v174_v36 }
 0x135   :  { %v676_v56 = vpop.permute.xlu1 %675 }
 0x136   :  { %v699_v50 = vmul.f32 %v676_v56, %v1945_v40  ;;  %v700_v57 = vmul.f32 %v676_v56, %v1947_v42  ;;  %v684_v43 = vpop.permute.xlu2 %683  ;;  %v193_v56 = vmax.f32 %v170_v25, 0.0 }
 0x137   :  { %721 = vadd.xlane.f32.xlu2 %v720_v58  ;;  %v1987_v58 = vmul.f32 %v1930_v10, %v192_v44  ;;  %v707_v61 = vmul.f32 %v684_v43, %v1979_v27 }
 0x138   :  { %v726_v31 = vsel %vm353_vm0, %v700_v57, 0.0  ;;  %v723_v38 = vsel %vm353_vm0, %v699_v50, 0.0  ;;  %v180_v57 = vadd.f32 %v1918_v54, %v1828_v49  ;;  %v1990_v60 = vmul.f32 %v1900_v34, %v193_v56 }
 0x139   :  { %727 = vadd.xlane.f32.xlu1 %v726_v31  ;;  %724 = vadd.xlane.f32.xlu0 %v723_v38  ;;  %v196_v31 = vmax.f32 %v178_v6, 0.0  ;;  %v195_v38 = vmax.f32 %v175_v37, 0.0  ;;  %v747_v34 = vsel %vm353_vm0, %v707_v61, 0.0 }
 0x13a   :  { %v197_v63 = vmax.f32 %v180_v57, 0.0  ;;  %v42_v57 = vld [vmem:[%s2395_s6] sm:$0xff]  ;;  %s1646_s6 = smov 88  }
 0x13b   :  { %v1998_v10 = vmul.f32 %v295_v18, %v196_v31  ;;  %vm491_vm8 = vcmp.eq.f32.partialorder %v42_v57, 0.0 }
 0x13d   :  { %v678_v14 = vpop.permute.xlu1 %677 }
 0x13e   :  { %v701_v15 = vmul.f32 %v678_v14, %v1960_v3  ;;  %v702_v16 = vmul.f32 %v678_v14, %v1958_v1  ;;  %v686_v54 = vpop.permute.xlu2 %685  ;;  %v2001_v14 = vmul.f32 %v1910_v41, %v195_v38 }
 0x13f   :  { %v709_v21 = vmul.f32 %v686_v54, %v1998_v10 }
 0x140   :  { %v732_v23 = vsel %vm353_vm0, %v702_v16, 0.0  ;;  %v729_v24 = vsel %vm353_vm0, %v701_v15, 0.0  ;;  %v2004_v15 = vmul.f32 %v1913_v47, %v197_v63  ;;  %v708_v16 = vmul.f32 %v684_v43, %v2001_v14 }
 0x141   :  { %733 = vadd.xlane.f32.xlu0 %v732_v23  ;;  %730 = vadd.xlane.f32.xlu2 %v729_v24  ;;  %v753_v23 = vsel %vm353_vm0, %v709_v21, 0.0 }
 0x142   :  { %v710_v22 = vmul.f32 %v686_v54, %v2004_v15  ;;  %v750_v24 = vsel %vm353_vm0, %v708_v16, 0.0 }
 0x144   :  { %v756_v18 = vsel %vm353_vm0, %v710_v22, 0.0 }
 0x145   :  { %v680_v29 = vpop.permute.xlu1 %679 }
 0x146   :  { %v703_v32 = vmul.f32 %v680_v29, %v1968_v46  ;;  %v704_v35 = vmul.f32 %v680_v29, %v1971_v53 }
 0x148   :  { %v735_v55 = vsel %vm353_vm0, %v703_v32, 0.0  ;;  %v738_v50 = vsel %vm353_vm0, %v704_v35, 0.0 }
 0x149   :  { %736 = vadd.xlane.f32.xlu1 %v735_v55  ;;  %739 = vadd.xlane.f32.xlu2 %v738_v50 }
 0x14d   :  { %v682_v51 = vpop.permute.xlu1 %681 }
 0x14e   :  { %v705_v62 = vmul.f32 %v682_v51, %v1987_v58  ;;  %v706_v48 = vmul.f32 %v682_v51, %v1990_v60 }
 0x150   :  { %v744_v11 = vsel %vm353_vm0, %v706_v48, 0.0  ;;  %v741_v49 = vsel %vm353_vm0, %v705_v62, 0.0 }
 0x151   :  { %745 = vadd.xlane.f32.xlu1 %v744_v11  ;;  %742 = vadd.xlane.f32.xlu0 %v741_v49 }
 0x152   :  { %748 = vadd.xlane.f32.xlu2 %v747_v34 }
 0x156   :  { %v469_v41 = vpop.xlane.xlu0 %468 }
 0x157   :  { %v502_v26 = vperm.slane %v469_v41, %v2013_v45 }
 0x159   :  { %754 = vadd.xlane.f32.xlu1 %v753_v23  ;;  %751 = vadd.xlane.f32.xlu0 %v750_v24 }
 0x15a   :  { %757 = vadd.xlane.f32.xlu2 %v756_v18 }
 0x15e   :  { %v478_v29 = vpop.xlane.xlu0 %477 }
 0x15f   :  { %v475_v47 = vpop.xlane.xlu2 %474  ;;  %v505_v0 = vperm.slane %v478_v29, %v2013_v45 }
 0x160   :  { %v504_v35 = vperm.slane %v475_v47, %v2013_v45  ;;  %v2035_v47 = vadd.s32 4294967288, %v2013_v45 }
 0x166   :  { %v487_v6 = vpop.xlane.xlu0 %486 }
 0x167   :  { %v484_v56 = vpop.xlane.xlu2 %483  ;;  %v508_v51 = vperm.slane %v487_v6, %v2013_v45 }
 0x168   :  { %v507_v37 = vperm.slane %v484_v56, %v2013_v45 }
 0x178   :  { %v472_v59 = vpop.xlane.xlu1 %471 }
 0x179   :  { %v503_v25 = vperm.slane %v472_v59, %v2013_v45 }
 0x17b   :  { %v511_v32 = vsel %vm510_vm1, %v503_v25, %v502_v26 }
 0x17c   :  { %v513_v36 = vsel %vm512_vm2, %v504_v35, %v511_v32 }
 0x17d   :  { %v515_v55 = vsel %vm514_vm3, %v505_v0, %v513_v36 }
 0x180   :  { %v481_v43 = vpop.xlane.xlu1 %480 }
 0x181   :  { %v506_v44 = vperm.slane %v481_v43, %v2013_v45 }
 0x183   :  { %v517_v50 = vsel %vm516_vm4, %v506_v44, %v515_v55 }
 0x184   :  { %v519_v61 = vsel %vm518_vm5, %v507_v37, %v517_v50 }
 0x185   :  { %v521_v62 = vsel %vm520_vm6, %v508_v51, %v519_v61 }
 0x188   :  { %v490_v31 = vpop.xlane.xlu1 %489 }
 0x189   :  { %v509_v38 = vperm.slane %v490_v31, %v2013_v45 }
 0x18b   :  { %v523_v48 = vsel %vm522_vm7, %v509_v38, %v521_v62 }
 0x18c   :  { %v525_v63 = vsel %vm491_vm8, -1e+30, %v523_v48 }
 0x18d   :  { %v527_v11 = vsel %vm526_vm9, %v525_v63, -inf }
 0x18e   :  { %528 = vmax.xlane.f32.xlu0 %v527_v11 }
 0x1a2   :  { %v713_v49 = vpop.xlane.xlu2 %712  ;;  %v716_v54 = vpop.xlane.xlu0 %715 }
 0x1a3   :  { %v778_v25 = vperm.slane %v716_v54, %v2035_v47  ;;  %v776_v26 = vperm.slane %v713_v49, %v2013_v45 }
 0x1a4   :  { %v719_v34 = vpop.xlane.xlu1 %718 }
 0x1a5   :  { %v781_v29 = vperm.slane %v719_v34, %v2013_v45  ;;  %v780_v37 = vsel %vm779_vm10, %v778_v25, %v776_v26 }
 0x1aa   :  { %v722_v16 = vpop.xlane.xlu2 %721 }
 0x1ab   :  { %v782_v59 = vperm.slane %v722_v16, %v2035_v47 }
 0x1ac   :  { %v725_v21 = vpop.xlane.xlu0 %724  ;;  %v728_v22 = vpop.xlane.xlu1 %727 }
 0x1ad   :  { %v785_v36 = vperm.slane %v728_v22, %v2035_v47  ;;  %v784_v43 = vperm.slane %v725_v21, %v2013_v45  ;;  %v783_v44 = vsel %vm779_vm10, %v782_v59, %v781_v29 }
 0x1ae   :  { %v802_v51 = vsel %vm510_vm1, %v783_v44, %v780_v37 }
 0x1af   :  { %v786_v31 = vsel %vm779_vm10, %v785_v36, %v784_v43 }
 0x1b0   :  { %v803_v48 = vsel %vm512_vm2, %v786_v31, %v802_v51 }
 0x1b4   :  { %v731_v23 = vpop.xlane.xlu2 %730  ;;  %v734_v24 = vpop.xlane.xlu0 %733 }
 0x1b5   :  { %v788_v56 = vperm.slane %v734_v24, %v2035_v47  ;;  %v787_v55 = vperm.slane %v731_v23, %v2013_v45 }
 0x1b7   :  { %v789_v38 = vsel %vm779_vm10, %v788_v56, %v787_v55 }
 0x1b8   :  { %v804_v34 = vsel %vm514_vm3, %v789_v38, %v803_v48 }
 0x1bc   :  { %v737_v18 = vpop.xlane.xlu1 %736  ;;  %v740_v41 = vpop.xlane.xlu2 %739 }
 0x1bd   :  { %v790_v50 = vperm.slane %v737_v18, %v2013_v45  ;;  %v791_v6 = vperm.slane %v740_v41, %v2035_v47 }
 0x1bf   :  { %v792_v62 = vsel %vm779_vm10, %v791_v6, %v790_v50 }
 0x1c0   :  { %v805_v24 = vsel %vm516_vm4, %v792_v62, %v804_v34 }
 0x1c4   :  { %v746_v32 = vpop.xlane.xlu1 %745  ;;  %v743_v35 = vpop.xlane.xlu0 %742 }
 0x1c5   :  { %v749_v0 = vpop.xlane.xlu2 %748  ;;  %v794_v57 = vperm.slane %v746_v32, %v2035_v47  ;;  %v793_v61 = vperm.slane %v743_v35, %v2013_v45 }
 0x1c6   :  { %v796_v16 = vperm.slane %v749_v0, %v2013_v45 }
 0x1c7   :  { %v795_v11 = vsel %vm779_vm10, %v794_v57, %v793_v61 }
 0x1c8   :  { %v806_v59 = vsel %vm518_vm5, %v795_v11, %v805_v24 }
 0x1cc   :  { %v755_v49 = vpop.xlane.xlu1 %754  ;;  %v752_v54 = vpop.xlane.xlu0 %751 }
 0x1cd   :  { %v799_v21 = vperm.slane %v755_v49, %v2013_v45  ;;  %v797_v22 = vperm.slane %v752_v54, %v2035_v47  ;;  %v758_v23 = vpop.xlane.xlu2 %757 }
 0x1ce   :  { %v800_v18 = vperm.slane %v758_v23, %v2035_v47 }
 0x1cf   :  { %v798_v41 = vsel %vm779_vm10, %v797_v22, %v796_v16 }
 0x1d0   :  { %v801_v25 = vsel %vm779_vm10, %v800_v18, %v799_v21  ;;  %v807_v26 = vsel %vm520_vm6, %v798_v41, %v806_v59 }
 0x1d1   :  { %v808_v29 = vsel %vm522_vm7, %v801_v25, %v807_v26 }
 0x1d2   :  { %v810_v32 = vsel %vm759_vm11, -1e+30, %v808_v29 }
 0x1d3   :  { %v812_v35 = vsel %vm811_vm12, %v810_v32, -inf }
 0x1d4   :  { %813 = vmax.xlane.f32.xlu1 %v812_v35 }
 0x201   :  { %v529_v36 = vpop.xlane.xlu0 %528 }
 0x202   :  { %v530_v43 = vsub.f32 %v525_v63, %v529_v36 }
 0x204   :  { %v531_v0 = vmul.f32 1.442695, %v530_v43 }
 0x206   :  { %1618 = vpow2.f32 %v531_v0 }
 0x20c   :  { %v1619_v44 = vpop.eup %1618 }
 0x20d   :  { %v533_v5 = vsel %vm526_vm9, %v1619_v44, 0.0 }
 0x20e   :  { %534 = vadd.xlane.f32.xlu2 %v533_v5 }
 0x247   :  { %v814_v56 = vpop.xlane.xlu1 %813 }
 0x248   :  { %v815_v55 = vsub.f32 %v810_v32, %v814_v56 }
 0x24a   :  { %v816_v50 = vmul.f32 1.442695, %v815_v55 }
 0x24c   :  { %1620 = vpow2.f32 %v816_v50 }
 0x252   :  { %v1621_v6 = vpop.eup %1620 }
 0x253   :  { %v818_v37 = vsel %vm811_vm12, %v1621_v6, 0.0 }
 0x254   :  { %819 = vadd.xlane.f32.xlu0 %v818_v37 }
 0x281   :  { %v535_v57 = vpop.xlane.xlu2 %534 }
 0x282   :  { %1622 = vrcp.f32 %v535_v57  ;;  %v547_v63 = vand.u32 2147483648, %v535_v57  ;;  %v545_v62 = vand.u32 2147483647, %v535_v57  ;;  %vm541_vm14 = vweird.f32 %v535_v57 }
 0x284   :  { %v548_v11 = vor.u32 1.1754944e-38, %v547_v63  ;;  %vm546_vm8 = vcmp.eq.f32.partialorder %v545_v62, 8.507059e+37  ;;  %v318_v62 = vld [vmem:[%s2397_s1] sm:$0xff]  ;;  %s1644_s1 = smov 64  }
 0x288   :  { %v1623_v61 = vpop.eup %1622 }
 0x289   :  { %v537_v51 = vmul.f32 %v1623_v61, %v535_v57  ;;  %vm542_vm13 = vweird.f32 %v1623_v61 }
 0x28a   :  { %vm543_vm15 = vmor %vm541_vm14, %vm542_vm13 }
 0x28b   :  { %v538_v31 = vsub.f32 1.0, %v537_v51 }
 0x28d   :  { %v539_v38 = vmul.f32 %v1623_v61, %v538_v31 }
 0x28f   :  { %v540_v48 = vadd.f32 %v1623_v61, %v539_v38 }
 0x291   :  { %v544_v49 = vsel %vm543_vm15, %v1623_v61, %v540_v48  ;;  %v319_v48 = vpack.c.bf16 %v318_v62, %v318_v62 }
 0x292   :  { %v549_v54 = vsel %vm546_vm8, %v548_v11, %v544_v49  ;;  %vm410_vm8 = vcmask 523264  }
 0x293   :  { %v2072_v34 = vmul.f32 %v1619_v44, %v549_v54  ;;  %328 = vmatmul.bf16.vlgmr.msrb.gmra.mxu1 %v319_v48 }
 0x295   :  { %v565_v16 = vperm.slane %v2072_v34, 2  ;;  %v558_v21 = vperm.slane %v2072_v34, 1  ;;  %v551_v22 = vperm.slane %v2072_v34, 0  ;;  %v1378_v23 = vsel %vm526_vm9, %v2072_v34, 0.0 }
 0x296   :  { %1438 = vst [vmem:[%s2396_s11 + $0x20] sm:$0xff] %v1378_v23  ;;  %v579_v24 = vperm.slane %v2072_v34, 4  ;;  %v572_v18 = vperm.slane %v2072_v34, 3  ;;  %v593_v41 = vperm.slane %v2072_v34, 6  ;;  %v586_v59 = vperm.slane %v2072_v34, 5 }
 0x297   :  { %570 = vperm.xlu0 %1599, %v565_v16   ;;  %563 = vperm.xlu2 %1598, %v558_v21   ;;  %v600_v25 = vperm.slane %v2072_v34, 7 }
 0x298   :  { %556 = vperm.xlu1 %1596, %v551_v22  }
 0x29f   :  { %584 = vperm.xlu2 %1598, %v579_v24   ;;  %1600 = vset.pattern.permute.xlu0 %v1720_v4 }
 0x2a0   :  { %577 = vperm.xlu1 %1596, %v572_v18  }
 0x2a7   :  { %598 = vperm.xlu2 %1598, %v593_v41  }
 0x2a8   :  { %591 = vperm.xlu1 %1596, %v586_v59  }
 0x2b0   :  { %605 = vperm.xlu1 %1596, %v600_v25  }
 0x2c7   :  { %v820_v26 = vpop.xlane.xlu0 %819 }
 0x2c8   :  { %1624 = vrcp.f32 %v820_v26  ;;  %v832_v36 = vand.u32 2147483648, %v820_v26  ;;  %v830_v0 = vand.u32 2147483647, %v820_v26  ;;  %vm826_vm13 = vweird.f32 %v820_v26 }
 0x2ca   :  { %v833_v5 = vor.u32 1.1754944e-38, %v832_v36  ;;  %vm831_vm15 = vcmp.eq.f32.partialorder %v830_v0, 8.507059e+37 }
 0x2ce   :  { %v1625_v29 = vpop.eup %1624 }
 0x2cf   :  { %v822_v32 = vmul.f32 %v1625_v29, %v820_v26  ;;  %vm827_vm11 = vweird.f32 %v1625_v29 }
 0x2d0   :  { %vm828_vm14 = vmor %vm826_vm13, %vm827_vm11 }
 0x2d1   :  { %v823_v35 = vsub.f32 1.0, %v822_v32 }
 0x2d3   :  { %v824_v43 = vmul.f32 %v1625_v29, %v823_v35 }
 0x2d5   :  { %v825_v44 = vadd.f32 %v1625_v29, %v824_v43 }
 0x2d7   :  { %v829_v56 = vsel %vm828_vm14, %v1625_v29, %v825_v44 }
 0x2d8   :  { %v834_v55 = vsel %vm831_vm15, %v833_v5, %v829_v56 }
 0x2d9   :  { %v2088_v50 = vmul.f32 %v1621_v6, %v834_v55 }
 0x2db   :  { %v836_v37 = vperm.slane %v2088_v50, 0  ;;  %v849_v57 = vperm.slane %v2088_v50, 1  ;;  %v1377_v61 = vsel %vm811_vm12, %v2088_v50, 0.0  ;;  %v862_v51 = vperm.slane %v2088_v50, 2 }
 0x2dc   :  { %1437 = vst [vmem:[%s2396_s11 + $0x18] sm:$0xff] %v1377_v61  ;;  %v875_v6 = vperm.slane %v2088_v50, 3  ;;  %v901_v31 = vperm.slane %v2088_v50, 5  ;;  %v888_v63 = vperm.slane %v2088_v50, 4  ;;  %v914_v23 = vperm.slane %v2088_v50, 6 }
 0x2dd   :  { %847 = vperm.xlu0 %1600, %v836_v37   ;;  %841 = vperm.xlu2 %1598, %v836_v37   ;;  %v927_v43 = vperm.slane %v2088_v50, 7 }
 0x2de   :  { %854 = vperm.xlu1 %1596, %v849_v57  }
 0x2e5   :  { %1602 = vset.pattern.permute.xlu0 %v1711_v2  ;;  %1601 = vset.pattern.permute.xlu2 %v1720_v4 }
 0x2e6   :  { %867 = vperm.xlu1 %1596, %v862_v51  }
 0x2ed   :  { %880 = vperm.xlu0 %1602, %v875_v6   ;;  %860 = vperm.xlu2 %1601, %v849_v57  }
 0x2ee   :  { %1603 = vset.pattern.permute.xlu1 %v1720_v4 }
 0x2f1   :  { %v564_v38 = vpop.permute.xlu2 %563 }
 0x2f2   :  { %v608_v49 = vmul.f32 %v564_v38, %v1891_v28 }
 0x2f4   :  { %v622_v24 = vsel %vm353_vm0, %v608_v49, 0.0 }
 0x2f5   :  { %1605 = vset.pattern.permute.xlu0 %v1720_v4  ;;  %873 = vperm.xlu2 %1601, %v862_v51  }
 0x2f6   :  { %886 = vperm.xlu1 %1603, %v875_v6  }
 0x2f9   :  { %v585_v11 = vpop.permute.xlu2 %584 }
 0x2fa   :  { %v611_v28 = vmul.f32 %v585_v11, %v1898_v33 }
 0x2fc   :  { %v643_v35 = vsel %vm353_vm0, %v611_v28, 0.0 }
 0x2fd   :  { %912 = vperm.xlu0 %1605, %v901_v31   ;;  %1604 = vset.pattern.permute.xlu2 %v1711_v2  ;;  %v644_v56 = vrot.slane %v643_v35, 4 }
 0x2fe   :  { %899 = vperm.xlu1 %1603, %v888_v63  }
 0x301   :  { %v599_v25 = vpop.permute.xlu2 %598 }
 0x302   :  { %v613_v36 = vmul.f32 %v599_v25, %v1875_v19  ;;  %v645_v19 = vadd.f32 %v644_v56, %v643_v35 }
 0x304   :  { %v657_v37 = vsel %vm353_vm0, %v613_v36, 0.0  ;;  %v646_v49 = vrot.slane %v645_v19, 2 }
 0x305   :  { %893 = vperm.xlu2 %1604, %v888_v63  }
 0x306   :  { %1606 = vset.pattern.permute.xlu1 %v1711_v2  ;;  %v623_v2 = vrot.slane %v622_v24, 4 }
 0x308   :  { %v624_v32 = vadd.f32 %v623_v2, %v622_v24  ;;  %v647_v2 = vadd.f32 %v646_v49, %v645_v19 }
 0x309   :  { %v571_v54 = vpop.permute.xlu0 %570 }
 0x30a   :  { %v609_v16 = vmul.f32 %v571_v54, %v1866_v13  ;;  %v557_v21 = vpop.permute.xlu1 %556  ;;  %v625_v55 = vrot.slane %v624_v32, 2  ;;  %v648_v36 = vrot.slane %v647_v2, 1 }
 0x30b   :  { %v607_v22 = vmul.f32 %v557_v21, %v1854_v9 }
 0x30c   :  { %v629_v41 = vsel %vm353_vm0, %v609_v16, 0.0  ;;  %v626_v63 = vadd.f32 %v625_v55, %v624_v32  ;;  %v649_v55 = vadd.f32 %v648_v36, %v647_v2  ;;  %v1559_v2 = vld [vmem:[%s2398_s9 + $0x10] sm:$0xff] }
 0x30d   :  { %v615_v18 = vsel %vm353_vm0, %v607_v22, 0.0  ;;  %906 = vperm.xlu2 %1604, %v901_v31   ;;  %v630_v26 = vrot.slane %v629_v41, 4  ;;  %v658_v31 = vrot.slane %v657_v37, 4 }
 0x30e   :  { %v616_v59 = vrot.slane %v615_v18, 4  ;;  %919 = vperm.xlu1 %1606, %v914_v23   ;;  %v627_v16 = vrot.slane %v626_v63, 1 }
 0x30f   :  { %v631_v0 = vadd.f32 %v630_v26, %v629_v41  ;;  %v659_v54 = vadd.f32 %v658_v31, %v657_v37 }
 0x310   :  { %v617_v13 = vadd.f32 %v616_v59, %v615_v18  ;;  %v628_v25 = vadd.f32 %v627_v16, %v626_v63 }
 0x311   :  { %v632_v57 = vrot.slane %v631_v0, 2  ;;  %v660_v28 = vrot.slane %v659_v54, 2 }
 0x312   :  { %v578_v29 = vpop.permute.xlu1 %577  ;;  %v618_v5 = vrot.slane %v617_v13, 2 }
 0x313   :  { %v610_v9 = vmul.f32 %v578_v29, %v1861_v12  ;;  %v633_v38 = vadd.f32 %v632_v57, %v631_v0  ;;  %v661_v0 = vadd.f32 %v660_v28, %v659_v54  ;;  %v1563_v28 = vld [vmem:[%s2398_s9 + $0x30] sm:$0xff] }
 0x314   :  { %v619_v61 = vadd.f32 %v618_v5, %v617_v13 }
 0x315   :  { %v636_v44 = vsel %vm353_vm0, %v610_v9, 0.0  ;;  %1607 = vset.pattern.permute.xlu2 %v1720_v4  ;;  %v634_v22 = vrot.slane %v633_v38, 1  ;;  %v662_v37 = vrot.slane %v661_v0, 1 }
 0x316   :  { %v637_v33 = vrot.slane %v636_v44, 4  ;;  %932 = vperm.xlu1 %1606, %v927_v43   ;;  %v620_v62 = vrot.slane %v619_v61, 1 }
 0x317   :  { %v635_v13 = vadd.f32 %v634_v22, %v633_v38 }
 0x318   :  { %v638_v12 = vadd.f32 %v637_v33, %v636_v44  ;;  %v621_v24 = vadd.f32 %v620_v62, %v619_v61 }
 0x31a   :  { %v639_v51 = vrot.slane %v638_v12, 2  ;;  %v592_v6 = vpop.permute.xlu1 %591  ;;  %v1052_v29 = vsel %vm510_vm1, %v628_v25, %v621_v24 }
 0x31b   :  { %v612_v50 = vmul.f32 %v592_v6, %v1880_v20  ;;  %v1053_v5 = vsel %vm512_vm2, %v635_v13, %v1052_v29  ;;  %v1558_v13 = vld [vmem:[%s2398_s9 + $0x8] sm:$0xff] }
 0x31c   :  { %v640_v48 = vadd.f32 %v639_v51, %v638_v12  ;;  %v663_v51 = vadd.f32 %v662_v37, %v661_v0 }
 0x31d   :  { %v650_v4 = vsel %vm353_vm0, %v612_v50, 0.0  ;;  %925 = vperm.xlu2 %1607, %v914_v23   ;;  %v1640_v50 = vld [vmem:[%s2393_s3] sm:$0xff] }
 0x31e   :  { %v651_v11 = vrot.slane %v650_v4, 4  ;;  %v641_v18 = vrot.slane %v640_v48, 1 }
 0x320   :  { %v652_v21 = vadd.f32 %v651_v11, %v650_v4  ;;  %v642_v9 = vadd.f32 %v641_v18, %v640_v48  ;;  %v1560_v18 = vld [vmem:[%s2398_s9 + $0x18] sm:$0xff] }
 0x321   :  { %418 = vmatpush.bf16.msra.mxu3 %v1560_v18 }
 0x322   :  { %v653_v41 = vrot.slane %v652_v21, 2  ;;  %v606_v59 = vpop.permute.xlu1 %605  ;;  %v1054_v33 = vsel %vm514_vm3, %v642_v9, %v1053_v5 }
 0x323   :  { %v614_v20 = vmul.f32 %v606_v59, %v1907_v39  ;;  %v1055_v57 = vsel %vm516_vm4, %v649_v55, %v1054_v33 }
 0x324   :  { %v654_v26 = vadd.f32 %v653_v41, %v652_v21  ;;  %v1564_v41 = vld [vmem:[%s2398_s9 + $0x38] sm:$0xff] }
 0x325   :  { %v664_v23 = vsel %vm353_vm0, %v614_v20, 0.0  ;;  %938 = vperm.xlu2 %1607, %v927_v43   ;;  %1103 = vmatpush.bf16.msra.mxu2 %v1564_v41 }
 0x326   :  { %v655_v32 = vrot.slane %v654_v26, 1  ;;  %v665_v35 = vrot.slane %v664_v23, 4  ;;  %419 = vmatpush.bf16.msra.mxu3 %v1559_v2 }
 0x328   :  { %v666_v44 = vadd.f32 %v665_v35, %v664_v23  ;;  %v656_v56 = vadd.f32 %v655_v32, %v654_v26  ;;  %v1562_v23 = vld [vmem:[%s2398_s9 + $0x28] sm:$0xff] }
 0x329   :  { %1104 = vmatpush.bf16.msra.mxu2 %v1563_v28 }
 0x32a   :  { %v667_v39 = vrot.slane %v666_v44, 2  ;;  %v1056_v61 = vsel %vm518_vm5, %v656_v56, %v1055_v57  ;;  %420 = vmatpush.bf16.msra.mxu3 %v1558_v13 }
 0x32b   :  { %v1057_v19 = vsel %vm520_vm6, %v663_v51, %v1056_v61 }
 0x32c   :  { %v668_v12 = vadd.f32 %v667_v39, %v666_v44  ;;  %v2173_v44 = vpop.f32.mrf.mxu1 }
 0x32d   :  { %1105 = vmatpush.bf16.msra.mxu2 %v1562_v23 }
 0x32e   :  { %v669_v43 = vrot.slane %v668_v12, 1 }
 0x330   :  { %v670_v6 = vadd.f32 %v669_v43, %v668_v12 }
 0x332   :  { %v2136_v31 = vsel %vm522_vm7, %v670_v6, %v1057_v19 }
 0x333   :  { %v1608_v63 = vpack.i.bf16 %v2136_v31, %v1640_v50  ;;  %v1376_v38 = vsel %vm353_vm0, %v2136_v31, 0.0 }
 0x334   :  { %1436 = vst [vmem:[%s2396_s11 + $0x10] sm:$0xff] %v1376_v38 }
 0x335   :  { %1609 = vrot.lane.b32.xlu0 %v1608_v63, %s1643_s19 }
 0x337   :  { %v842_v4 = vpop.permute.xlu2 %841 }
 0x338   :  { %v940_v29 = vmul.f32 %v842_v4, %v1928_v8 }
 0x33a   :  { %v956_v37 = vsel %vm353_vm0, %v940_v29, 0.0 }
 0x347   :  { %v861_v62 = vpop.permute.xlu2 %860 }
 0x348   :  { %v943_v32 = vmul.f32 %v861_v62, %v1941_v30 }
 0x34a   :  { %v966_v43 = vsel %vm353_vm0, %v943_v32, 0.0  ;;  %v1557_v32 = vld [vmem:[%s2398_s9] sm:$0xff] }
 0x34b   :  { %421 = vmatpush.bf16.msra.mxu3 %v1557_v32 }
 0x34f   :  { %v874_v11 = vpop.permute.xlu2 %873  ;;  %v848_v21 = vpop.permute.xlu0 %847 }
 0x350   :  { %v855_v48 = vpop.permute.xlu1 %854  ;;  %v941_v25 = vmul.f32 %v848_v21, %v1926_v7  ;;  %v945_v35 = vmul.f32 %v874_v11, %v1947_v42 }
 0x351   :  { %v942_v26 = vmul.f32 %v855_v48, %v1934_v17 }
 0x352   :  { %v957_v56 = vsel %vm353_vm0, %v941_v25, 0.0  ;;  %v975_v61 = vsel %vm353_vm0, %v945_v35, 0.0  ;;  %v1561_v35 = vld [vmem:[%s2398_s9 + $0x20] sm:$0xff] }
 0x353   :  { %v965_v39 = vsel %vm353_vm0, %v942_v26, 0.0  ;;  %v958_v19 = vadd.f32 %v957_v56, %v956_v37  ;;  %1106 = vmatpush.bf16.msra.mxu2 %v1561_v35 }
 0x354   :  { %v967_v50 = vadd.f32 %v966_v43, %v965_v39 }
 0x355   :  { %v959_v2 = vrot.slane %v958_v19, 4 }
 0x356   :  { %v968_v28 = vrot.slane %v967_v50, 4 }
 0x358   :  { %v868_v49 = vpop.permute.xlu1 %867  ;;  %v969_v56 = vadd.f32 %v968_v28, %v967_v50 }
 0x359   :  { %v944_v9 = vmul.f32 %v868_v49, %v1945_v40 }
 0x35b   :  { %v974_v12 = vsel %vm353_vm0, %v944_v9, 0.0 }
 0x35c   :  { %v976_v62 = vadd.f32 %v975_v61, %v974_v12 }
 0x35e   :  { %v977_v13 = vrot.slane %v976_v62, 4 }
 0x35f   :  { %v894_v54 = vpop.permute.xlu2 %893  ;;  %v881_v59 = vpop.permute.xlu0 %880 }
 0x360   :  { %v946_v55 = vmul.f32 %v881_v59, %v1960_v3  ;;  %v948_v57 = vmul.f32 %v894_v54, %v1968_v46  ;;  %v331_v59 = vpop.f32.mrf.mxu1  ;;  %v978_v37 = vadd.f32 %v977_v13, %v976_v62 }
 0x362   :  { %v983_v48 = vsel %vm353_vm0, %v946_v55, 0.0  ;;  %v992_v49 = vsel %vm353_vm0, %v948_v57, 0.0  ;;  %v40_v55 = vld [vmem:[%s2399_s4] sm:$0xff] }
 0x363   :  { %1134 = vrot.lane.b32.xlu2 %v40_v55, %s1643_s19 }
 0x367   :  { %v907_v22 = vpop.permute.xlu2 %906 }
 0x368   :  { %v887_v16 = vpop.permute.xlu1 %886  ;;  %v950_v11 = vmul.f32 %v907_v22, %v1987_v58 }
 0x369   :  { %v947_v36 = vmul.f32 %v887_v16, %v1958_v1 }
 0x36a   :  { %v1001_v22 = vsel %vm353_vm0, %v950_v11, 0.0 }
 0x36b   :  { %v984_v51 = vsel %vm353_vm0, %v947_v36, 0.0 }
 0x36c   :  { %v985_v54 = vadd.f32 %v984_v51, %v983_v48 }
 0x36e   :  { %v986_v23 = vrot.slane %v985_v54, 4 }
 0x36f   :  { %v913_v5 = vpop.permute.xlu0 %912 }
 0x370   :  { %v900_v24 = vpop.permute.xlu1 %899  ;;  %v951_v6 = vmul.f32 %v913_v5, %v1990_v60  ;;  %v987_v12 = vadd.f32 %v986_v23, %v985_v54 }
 0x371   :  { %v949_v33 = vmul.f32 %v900_v24, %v1971_v53 }
 0x372   :  { %v1002_v21 = vsel %vm353_vm0, %v951_v6, 0.0  ;;  %v970_v6 = vrot.slane %v969_v56, 2 }
 0x373   :  { %v993_v63 = vsel %vm353_vm0, %v949_v33, 0.0  ;;  %v1003_v29 = vadd.f32 %v1002_v21, %v1001_v22  ;;  %v960_v33 = vadd.f32 %v959_v2, %v958_v19  ;;  %v988_v19 = vrot.slane %v987_v12, 2 }
 0x374   :  { %v994_v24 = vadd.f32 %v993_v63, %v992_v49  ;;  %v971_v49 = vadd.f32 %v970_v6, %v969_v56 }
 0x375   :  { %v1004_v57 = vrot.slane %v1003_v29, 4  ;;  %v961_v51 = vrot.slane %v960_v33, 2 }
 0x376   :  { %v995_v36 = vrot.slane %v994_v24, 4  ;;  %v972_v2 = vrot.slane %v971_v49, 1 }
 0x377   :  { %v926_v20 = vpop.permute.xlu2 %925  ;;  %v1005_v50 = vadd.f32 %v1004_v57, %v1003_v29  ;;  %v962_v11 = vadd.f32 %v961_v51, %v960_v33 }
 0x378   :  { %v953_v16 = vmul.f32 %v926_v20, %v2001_v14  ;;  %v996_v43 = vadd.f32 %v995_v36, %v994_v24  ;;  %v973_v29 = vadd.f32 %v972_v2, %v971_v49 }
 0x379   :  { %v1006_v62 = vrot.slane %v1005_v50, 2  ;;  %v963_v54 = vrot.slane %v962_v11, 1 }
 0x37a   :  { %v1011_v20 = vsel %vm353_vm0, %v953_v16, 0.0 }
 0x37b   :  { %v964_v23 = vadd.f32 %v963_v54, %v962_v11 }
 0x37f   :  { %v939_v38 = vpop.permute.xlu2 %938 }
 0x380   :  { %v920_v0 = vpop.permute.xlu1 %919  ;;  %v955_v18 = vmul.f32 %v939_v38, %v2004_v15  ;;  %v979_v38 = vrot.slane %v978_v37, 2 }
 0x381   :  { %v952_v4 = vmul.f32 %v920_v0, %v1979_v27 }
 0x382   :  { %v1020_v0 = vsel %vm353_vm0, %v955_v18, 0.0  ;;  %v980_v21 = vadd.f32 %v979_v38, %v978_v37  ;;  %v989_v18 = vadd.f32 %v988_v19, %v987_v12 }
 0x383   :  { %v1010_v25 = vsel %vm353_vm0, %v952_v4, 0.0  ;;  %v997_v4 = vrot.slane %v996_v43, 2 }
 0x384   :  { %v1012_v5 = vadd.f32 %v1011_v20, %v1010_v25  ;;  %v981_v28 = vrot.slane %v980_v21, 1  ;;  %v990_v25 = vrot.slane %v989_v18, 1 }
 0x386   :  { %v1013_v61 = vrot.slane %v1012_v5, 4  ;;  %v991_v32 = vadd.f32 %v990_v25, %v989_v18 }
 0x388   :  { %v933_v41 = vpop.permute.xlu1 %932  ;;  %v1014_v48 = vadd.f32 %v1013_v61, %v1012_v5  ;;  %v1036_v5 = vsel %vm510_vm1, %v973_v29, %v964_v23 }
 0x389   :  { %v954_v26 = vmul.f32 %v933_v41, %v1998_v10  ;;  %v998_v41 = vadd.f32 %v997_v4, %v996_v43 }
 0x38a   :  { %v1015_v59 = vrot.slane %v1014_v48, 2 }
 0x38b   :  { %v1019_v9 = vsel %vm353_vm0, %v954_v26, 0.0  ;;  %v1007_v26 = vadd.f32 %v1006_v62, %v1005_v50  ;;  %v999_v13 = vrot.slane %v998_v41, 1 }
 0x38c   :  { %v1021_v39 = vadd.f32 %v1020_v0, %v1019_v9  ;;  %v1016_v22 = vadd.f32 %v1015_v59, %v1014_v48  ;;  %v982_v9 = vadd.f32 %v981_v28, %v980_v21 }
 0x38d   :  { %v1008_v35 = vrot.slane %v1007_v26, 1  ;;  %v1000_v36 = vadd.f32 %v999_v13, %v998_v41 }
 0x38e   :  { %v1022_v63 = vrot.slane %v1021_v39, 4  ;;  %v1017_v0 = vrot.slane %v1016_v22, 1  ;;  %v1037_v56 = vsel %vm512_vm2, %v982_v9, %v1036_v5 }
 0x38f   :  { %v1038_v37 = vsel %vm514_vm3, %v991_v32, %v1037_v56  ;;  %v1009_v12 = vadd.f32 %v1008_v35, %v1007_v26 }
 0x390   :  { %v1023_v16 = vadd.f32 %v1022_v63, %v1021_v39  ;;  %v1641_v39 = vld [vmem:[%s2392_s10] ss:$0 sm:$0xff]  ;;  %v1039_v57 = vsel %vm516_vm4, %v1000_v36, %v1038_v37  ;;  %v1018_v43 = vadd.f32 %v1017_v0, %v1016_v22 }
 0x391   :  { %v330_v55 = vadd.f32 %v1641_v39, %v2173_v44  ;;  %v1040_v63 = vsel %vm518_vm5, %v1009_v12, %v1039_v57 }
 0x392   :  { %v1024_v24 = vrot.slane %v1023_v16, 2  ;;  %v1041_v50 = vsel %vm520_vm6, %v1018_v43, %v1040_v63  ;;  %v2245_v43 = vld [vmem:[%s2392_s10 + $0x4] ss:$0 sm:$0xff] }
 0x393   :  { %v333_v51 = vmax.f32 %v330_v55, 0.0  ;;  %v1567_v63 = vld [vmem:[%s2391_s8 + $0x20] sm:$0xff] }
 0x394   :  { %v1025_v20 = vadd.f32 %v1024_v24, %v1023_v16  ;;  %v1615_v16 = vld [vmem:[%s2392_s10 + $0x2] ss:$0 sm:$0xff] }
 0x396   :  { %v1026_v33 = vrot.slane %v1025_v20, 1 }
 0x398   :  { %v1027_v61 = vadd.f32 %v1026_v33, %v1025_v20 }
 0x39a   :  { %v1042_v4 = vsel %vm522_vm7, %v1027_v61, %v1041_v50  ;;  %v1570_v61 = vld [vmem:[%s2391_s8 + $0x38] sm:$0xff] }
 0x39b   :  { %1219 = vmatpush.bf16.msrb.mxu3 %v1570_v61 }
 0x3a7   :  { %v1610_v6 = vpop.permute.xlu0 %1609 }
 0x3a8   :  { %v1612_v38 = vunpack.i.h.bf16 %v1610_v6  ;;  %v1611_v19 = vunpack.i.l.bf16 %v1610_v6  ;;  %v1568_v6 = vld [vmem:[%s2391_s8 + $0x28] sm:$0xff] }
 0x3aa   :  { %v1062_v48 = vsel %vm353_vm0, %v1042_v4, %v1612_v38  ;;  %v374_v44 = vsel %vm353_vm0, %v333_v51, %v1611_v19  ;;  %v1569_v51 = vld [vmem:[%s2391_s8 + $0x30] sm:$0xff]  ;;  %v1566_v38 = vld [vmem:[%s2391_s8 + $0x18] sm:$0xff]  ;;  %v1348_v19 = vmul.f32 %v2245_v43, %v2072_v34  ;;  %v1617_v34 = vld [vmem:[%s2392_s10 + $0x3] ss:$0 sm:$0xff] }
 0x3ab   :  { %v1063_v11 = vpack.c.bf16 %v1062_v48, %v1062_v48  ;;  %v375_v49 = vpack.c.bf16 %v374_v44, %v374_v44  ;;  %1220 = vmatpush.bf16.msrb.mxu3 %v1569_v51 }
 0x3ac   :  { %v1349_v50 = vsel %vm526_vm9, %v1348_v19, 0.0 }
 0x3ad   :  { %1502 = vmatmul.msk.bf16.vlgmr.msra.gmra.mxu3 %vm410_vm8, %v375_v49  ;;  %1519 = vmatmul.msk.bf16.vlgmr.msra.gmra.mxu2 %vm410_vm8, %v1063_v11 }
 0x3af   :  { %1221 = vmatpush.bf16.msrb.mxu3 %v1568_v6 }
 0x3b3   :  { %1222 = vmatpush.bf16.msrb.mxu3 %v1567_v63 }
 0x3b7   :  { %1223 = vmatpush.bf16.msrb.mxu3 %v1566_v38 }
 0x3bd   :  { %v1135_v33 = vpop.permute.xlu2 %1134 }
 0x430   :  { %v423_v21 = vpop.f32.mrf.mxu3  ;;  %v1108_v18 = vpop.f32.mrf.mxu2 }
 0x431   :  { %v424_v62 = vadd.f32 %v1615_v16, %v423_v21 }
 0x433   :  { %v1112_v41 = vadd.f32 %v1108_v18, %v424_v62 }
 0x435   :  { %1626 = vtanh.f32 %v1112_v41  ;;  %v1520_v24 = vmul.f32 -1.442695, %v1112_v41 }
 0x437   :  { %1628 = vpow2.f32 %v1520_v24 }
 0x438   :  { %v425_v59 = vpop.f32.mrf.mxu3  ;;  %v1110_v54 = vpop.f32.mrf.mxu2 }
 0x43b   :  { %v1627_v2 = vpop.eup %1626 }
 0x43c   :  { %1139 = vrot.lane.b32.xlu1 %v1627_v2, %s1643_s19 }
 0x43d   :  { %v1629_v28 = vpop.eup %1628 }
 0x43e   :  { %v1116_v25 = vadd.f32 1.0, %v1629_v28 }
 0x440   :  { %1630 = vrcp.f32 %v1116_v25  ;;  %v1128_v20 = vand.u32 2147483648, %v1116_v25  ;;  %vm1122_vm13 = vweird.f32 %v1116_v25  ;;  %v1126_v9 = vand.u32 2147483647, %v1116_v25 }
 0x442   :  { %v1129_v35 = vor.u32 1.1754944e-38, %v1128_v20  ;;  %vm1127_vm15 = vcmp.eq.f32.partialorder %v1126_v9, 8.507059e+37 }
 0x446   :  { %v1631_v26 = vpop.eup %1630 }
 0x447   :  { %v1118_v13 = vmul.f32 %v1631_v26, %v1116_v25  ;;  %vm1123_vm11 = vweird.f32 %v1631_v26 }
 0x448   :  { %vm1124_vm14 = vmor %vm1122_vm13, %vm1123_vm11  ;;  %vm1213_vm11 = vcmask 785408  }
 0x449   :  { %v1119_v22 = vsub.f32 1.0, %v1118_v13 }
 0x44b   :  { %v1120_v23 = vmul.f32 %v1631_v26, %v1119_v22 }
 0x44d   :  { %v1121_v29 = vadd.f32 %v1631_v26, %v1120_v23 }
 0x44f   :  { %v1125_v32 = vsel %vm1124_vm14, %v1631_v26, %v1121_v29 }
 0x450   :  { %v1130_v36 = vsel %vm1127_vm15, %v1129_v35, %v1125_v32 }
 0x451   :  { %v1137_v56 = vmul.f32 %v1135_v33, %v1130_v36 }
 0x4ae   :  { %v1140_v0 = vpop.permute.xlu1 %1139 }
 0x4af   :  { %v1142_v5 = vmul.f32 %v1140_v0, %v1130_v36 }
 0x4b1   :  { %1144 = vrot.lane.b32.xlu0 %v1142_v5, %s1643_s19 }
 0x4b9   :  { %1159 = vrot.lane.b32.xlu0 %v1042_v4, %s1644_s1  ;;  %v1565_v4 = vld [vmem:[%s2391_s8 + $0x10] sm:$0xff] }
 0x4ba   :  { %1224 = vmatpush.bf16.msrb.mxu3 %v1565_v4 }
 0x523   :  { %v1145_v39 = vpop.permute.xlu0 %1144 }
 0x524   :  { %v2231_v55 = vadd.f32 %v1145_v39, %v1137_v56 }
 0x526   :  { %1632 = vtanh.f32 %v2231_v55 }
 0x52b   :  { %v1160_v44 = vpop.permute.xlu0 %1159 }
 0x52c   :  { %v1633_v37 = vpop.eup %1632 }
 0x52d   :  { %1150 = vrot.lane.b32.xlu1 %v1633_v37, %s1643_s19 }
 0x59f   :  { %v2235_v12 = vpop.permute.xlu1 %1150 }
 0x5a0   :  { %v2238_v57 = vmul.f32 %v2235_v12, %v1130_v36 }
 0x5a2   :  { %1156 = vrot.lane.b32.xlu2 %v2238_v57, %s1642_s12 }
 0x5aa   :  { %1353 = vrot.lane.b32.xlu2 %v2245_v43, %s1645_s18 }
 0x5d3   :  { %1350 = vadd.xlane.f32.xlu2 %v1349_v50 }
 0x5fc   :  { %v1157_v48 = vpop.permute.xlu2 %1156 }
 0x5fd   :  { %v1162_v11 = vsel %vm353_vm0, %v2136_v31, %v1157_v48 }
 0x5fe   :  { %v1163_v49 = vsel %vm410_vm8, %v1162_v11, %v1160_v44 }
 0x5ff   :  { %v1164_v16 = vpack.c.bf16 %v1163_v49, %v1163_v49 }
 0x601   :  { %1545 = vmatmul.msk.bf16.vlgmr.msrb.gmra.mxu3 %vm1213_vm11, %v1164_v16 }
 0x684   :  { %v1226_v21 = vpop.f32.mrf.mxu3 }
 0x685   :  { %v1232_v18 = vadd.f32 %v1617_v34, %v1226_v21  ;;  %1322 = vrot.lane.b32.xlu1 %v1226_v21, %s1643_s19 }
 0x687   :  { %v1241_v62 = vperm.slane %v1232_v18, 0  ;;  %v1234_v41 = vrot.slane %v1232_v18, 1  ;;  %v1235_v59 = vrot.slane %v1232_v18, 2  ;;  %v1237_v22 = vrot.slane %v1232_v18, 4 }
 0x688   :  { %v1238_v20 = vrot.slane %v1232_v18, 5  ;;  %v1240_v35 = vrot.slane %v1232_v18, 7  ;;  %v1236_v37 = vrot.slane %v1232_v18, 3  ;;  %v1239_v6 = vrot.slane %v1232_v18, 6 }
 0x689   :  { %v1258_v54 = vmul.f32 %v1241_v62, %v1926_v7  ;;  %v1242_v2 = vperm.slane %v1234_v41, 0  ;;  %v1243_v28 = vperm.slane %v1235_v59, 0  ;;  %v2282_v29 = vperm.slane %v1237_v22, 0 }
 0x68a   :  { %v1246_v9 = vperm.slane %v1238_v20, 0  ;;  %v1257_v5 = vmul.f32 %v1241_v62, %v1928_v8  ;;  %v2300_v51 = vperm.slane %v1236_v37, 0  ;;  %v2309_v63 = vperm.slane %v1239_v6, 0 }
 0x68b   :  { %v1276_v31 = vsel %vm353_vm0, %v1258_v54, 0.0  ;;  %v1259_v24 = vmul.f32 %v1242_v2, %v1934_v17  ;;  %v1262_v13 = vmul.f32 %v1243_v28, %v1947_v42  ;;  %v1265_v7 = vmul.f32 %v2282_v29, %v1968_v46 }
 0x68c   :  { %1277 = vadd.xlane.f32.xlu2 %v1276_v31  ;;  %v1228_v25 = vpop.f32.mrf.mxu3  ;;  %v1268_v32 = vmul.f32 %v1246_v9, %v1990_v60  ;;  %v2289_v42 = vperm.slane %v1240_v35, 0  ;;  %v1273_v33 = vsel %vm353_vm0, %v1257_v5, 0.0  ;;  %v1260_v56 = vmul.f32 %v1242_v2, %v1941_v30 }
 0x68d   :  { %v1279_v26 = vsel %vm353_vm0, %v1259_v24, 0.0  ;;  %v1288_v23 = vsel %vm353_vm0, %v1262_v13, 0.0  ;;  %v1297_v17 = vsel %vm353_vm0, %v1265_v7, 0.0  ;;  %v1261_v39 = vmul.f32 %v1243_v28, %v1945_v40 }
 0x68e   :  { %1280 = vadd.xlane.f32.xlu0 %v1279_v26  ;;  %v1306_v36 = vsel %vm353_vm0, %v1268_v32, 0.0  ;;  %v1271_v0 = vmul.f32 %v2289_v42, %v1998_v10  ;;  %v1282_v60 = vsel %vm353_vm0, %v1260_v56, 0.0  ;;  %v1264_v8 = vmul.f32 %v2300_v51, %v1958_v1  ;;  %v1354_v1 = vpop.permute.xlu2 %1353 }
 0x68f   :  { %v1285_v61 = vsel %vm353_vm0, %v1261_v39, 0.0  ;;  %v1267_v30 = vmul.f32 %v1246_v9, %v1987_v58  ;;  %v1270_v38 = vmul.f32 %v2309_v63, %v2001_v14 }
 0x690   :  { %v1315_v46 = vsel %vm353_vm0, %v1271_v0, 0.0  ;;  %v1294_v10 = vsel %vm353_vm0, %v1264_v8, 0.0 }
 0x691   :  { %v1303_v40 = vsel %vm353_vm0, %v1267_v30, 0.0  ;;  %v1312_v19 = vsel %vm353_vm0, %v1270_v38, 0.0  ;;  %v1266_v30 = vmul.f32 %v2282_v29, %v1971_v53  ;;  %v1272_v29 = vmul.f32 %v2289_v42, %v2004_v15 }
 0x693   :  { %v1300_v6 = vsel %vm353_vm0, %v1266_v30, 0.0 }
 0x694   :  { %1289 = vadd.xlane.f32.xlu2 %v1288_v23 }
 0x69c   :  { %1298 = vadd.xlane.f32.xlu2 %v1297_v17 }
 0x6a4   :  { %1307 = vadd.xlane.f32.xlu2 %v1306_v36 }
 0x6ac   :  { %1316 = vadd.xlane.f32.xlu2 %v1315_v46 }
 0x6af   :  { %1274 = vadd.xlane.f32.xlu1 %v1273_v33 }
 0x6b7   :  { %1283 = vadd.xlane.f32.xlu1 %v1282_v60  ;;  %v1263_v60 = vmul.f32 %v2300_v51, %v1960_v3 }
 0x6b9   :  { %v1291_v8 = vsel %vm353_vm0, %v1263_v60, 0.0 }
 0x6bf   :  { %1286 = vadd.xlane.f32.xlu1 %v1285_v61 }
 0x6c4   :  { %1372 = vrot.lane.b32.xlu2 %v2231_v55, %s1642_s12  ;;  %v2316_v55 = vpop.xlane.xlu2 %1350 }
 0x6c7   :  { %1295 = vadd.xlane.f32.xlu1 %v1294_v10 }
 0x6cf   :  { %1304 = vadd.xlane.f32.xlu1 %v1303_v40 }
 0x6d7   :  { %1313 = vadd.xlane.f32.xlu1 %v1312_v19 }
 0x6f0   :  { %1367 = vrot.lane.b32.xlu1 %v2238_v57, %s1644_s1 }
 0x6f7   :  { %v1323_v50 = vpop.permute.xlu1 %1322 }
 0x6f8   :  { %v1325_v58 = vadd.f32 %v1323_v50, %v1833_v52  ;;  %v1318_v50 = vsel %vm353_vm0, %v1272_v29, 0.0 }
 0x6fa   :  { %v1546_v4 = vmul.f32 -1.442695, %v1325_v58 }
 0x6fc   :  { %1634 = vpow2.f32 %v1546_v4 }
 0x6ff   :  { %v1278_v48 = vpop.xlane.xlu2 %1277 }
 0x700   :  { %v1396_v26 = vperm.slane %v1278_v48, %v2035_v47 }
 0x701   :  { %v1281_v7 = vpop.xlane.xlu0 %1280 }
 0x702   :  { %v1635_v44 = vpop.eup %1634  ;;  %v1398_v17 = vperm.slane %v1281_v7, %v2013_v45 }
 0x703   :  { %v1329_v11 = vadd.f32 1.0, %v1635_v44 }
 0x705   :  { %1636 = vrcp.f32 %v1329_v11  ;;  %v1341_v18 = vand.u32 2147483648, %v1329_v11  ;;  %v1339_v57 = vand.u32 2147483647, %v1329_v11  ;;  %vm1335_vm8 = vweird.f32 %v1329_v11 }
 0x707   :  { %v1290_v49 = vpop.xlane.xlu2 %1289  ;;  %v1342_v52 = vor.u32 1.1754944e-38, %v1341_v18  ;;  %vm1340_vm14 = vcmp.eq.f32.partialorder %v1339_v57, 8.507059e+37 }
 0x708   :  { %v1402_v0 = vperm.slane %v1290_v49, %v2035_v47 }
 0x70b   :  { %v1637_v14 = vpop.eup %1636 }
 0x70c   :  { %v1331_v16 = vmul.f32 %v1637_v14, %v1329_v11  ;;  %vm1336_vm9 = vweird.f32 %v1637_v14 }
 0x70d   :  { %vm1337_vm13 = vmor %vm1335_vm8, %vm1336_vm9 }
 0x70e   :  { %v1332_v34 = vsub.f32 1.0, %v1331_v16 }
 0x70f   :  { %v2319_v21 = vpop.xlane.xlu2 %1298 }
 0x710   :  { %v1333_v62 = vmul.f32 %v1637_v14, %v1332_v34 }
 0x712   :  { %v1334_v41 = vadd.f32 %v1637_v14, %v1333_v62 }
 0x714   :  { %v1338_v59 = vsel %vm1337_vm13, %v1637_v14, %v1334_v41 }
 0x715   :  { %v1343_v54 = vsel %vm1340_vm14, %v1342_v52, %v1338_v59 }
 0x716   :  { %v1345_v2 = vmul.f32 %v1343_v54, %v2235_v12 }
 0x717   :  { %v1308_v31 = vpop.xlane.xlu2 %1307 }
 0x718   :  { %v1356_v24 = vmul.f32 %v1354_v1, %v1345_v2  ;;  %v1411_v37 = vperm.slane %v1308_v31, %v2035_v47  ;;  %v1269_v1 = vmul.f32 %v2309_v63, %v1979_v27  ;;  %v1407_v27 = vperm.slane %v2319_v21, %v2013_v45 }
 0x71a   :  { %1358 = vrot.lane.b32.xlu0 %v1356_v24, %s1644_s1  ;;  %v1309_v53 = vsel %vm353_vm0, %v1269_v1, 0.0 }
 0x71f   :  { %v2323_v28 = vpop.xlane.xlu2 %1316 }
 0x720   :  { %v1416_v2 = vperm.slane %v2323_v28, %v2013_v45 }
 0x722   :  { %v1275_v25 = vpop.xlane.xlu1 %1274 }
 0x723   :  { %v1395_v13 = vperm.slane %v1275_v25, %v2013_v45 }
 0x725   :  { %v1397_v22 = vsel %vm779_vm10, %v1396_v26, %v1395_v13 }
 0x727   :  { %v1373_v23 = vpop.permute.xlu2 %1372 }
 0x728   :  { %v1375_v20 = vsel %vm353_vm0, %v1373_v23, 0.0 }
 0x729   :  { %1435 = vst [vmem:[%s2396_s11 + $0x8] sm:$0xff] %v1375_v20 }
 0x72a   :  { %v1284_v12 = vpop.xlane.xlu1 %1283 }
 0x72b   :  { %v1399_v9 = vperm.slane %v1284_v12, %v2035_v47 }
 0x72d   :  { %v1400_v32 = vsel %vm779_vm10, %v1399_v9, %v1398_v17 }
 0x72e   :  { %v1419_v35 = vsel %vm510_vm1, %v1400_v32, %v1397_v22 }
 0x732   :  { %v1287_v36 = vpop.xlane.xlu1 %1286 }
 0x733   :  { %v1401_v5 = vperm.slane %v1287_v36, %v2013_v45 }
 0x735   :  { %v1403_v46 = vsel %vm779_vm10, %v1402_v0, %v1401_v5 }
 0x736   :  { %v1420_v33 = vsel %vm512_vm2, %v1403_v46, %v1419_v35 }
 0x73a   :  { %v1296_v56 = vpop.xlane.xlu1 %1295 }
 0x73b   :  { %v1405_v4 = vperm.slane %v1296_v56, %v2035_v47 }
 0x742   :  { %v1305_v39 = vpop.xlane.xlu1 %1304 }
 0x743   :  { %v1410_v61 = vperm.slane %v1305_v39, %v2013_v45 }
 0x744   :  { %1292 = vadd.xlane.f32.xlu0 %v1291_v8 }
 0x745   :  { %v1412_v10 = vsel %vm779_vm10, %v1411_v37, %v1410_v61 }
 0x74a   :  { %v1314_v40 = vpop.xlane.xlu1 %1313 }
 0x74b   :  { %v1414_v57 = vperm.slane %v1314_v40, %v2035_v47 }
 0x74c   :  { %1301 = vadd.xlane.f32.xlu0 %v1300_v6 }
 0x762   :  { %v1368_v38 = vpop.permute.xlu1 %1367 }
 0x763   :  { %v1370_v3 = vsel %vm353_vm0, %v1368_v38, 0.0 }
 0x764   :  { %1434 = vst [vmem:[%s2396_s11] sm:$0xff] %v1370_v3 }
 0x78c   :  { %v1359_v51 = vpop.permute.xlu0 %1358 }
 0x78d   :  { %v1361_v19 = vsel %vm353_vm0, %v1359_v51, 0.0  ;;  %vm1432_vm0 = vcmask 7168  }
 0x78e   :  { %1362 = vadd.xlane.f32.xlu0 %v1361_v19 }
 0x796   :  { %1310 = vadd.xlane.f32.xlu0 %v1309_v53 }
 0x79e   :  { %1319 = vadd.xlane.f32.xlu0 %v1318_v50 }
 0x7b7   :  { %v1293_v58 = vpop.xlane.xlu0 %1292 }
 0x7b8   :  { %v1404_v48 = vperm.slane %v1293_v58, %v2013_v45 }
 0x7ba   :  { %v1406_v44 = vsel %vm779_vm10, %v1405_v4, %v1404_v48 }
 0x7bb   :  { %v1421_v11 = vsel %vm514_vm3, %v1406_v44, %v1420_v33 }
 0x7bf   :  { %v1302_v49 = vpop.xlane.xlu0 %1301 }
 0x7c0   :  { %v1408_v63 = vperm.slane %v1302_v49, %v2035_v47 }
 0x7c2   :  { %v1409_v15 = vsel %vm779_vm10, %v1408_v63, %v1407_v27 }
 0x7c3   :  { %v1422_v42 = vsel %vm516_vm4, %v1409_v15, %v1421_v11 }
 0x7c4   :  { %v1423_v14 = vsel %vm518_vm5, %v1412_v10, %v1422_v42 }
 0x801   :  { %v1363_v16 = vpop.xlane.xlu0 %1362 }
 0x802   :  { %v1364_v34 = vadd.f32 %v1363_v16, %v2316_v55 }
 0x804   :  { %v1365_v18 = vadd.f32 %v2245_v43, %v1364_v34 }
 0x806   :  { %1638 = vtanh.f32 %v1365_v18 }
 0x809   :  { %v1311_v62 = vpop.xlane.xlu0 %1310 }
 0x80a   :  { %v1413_v41 = vperm.slane %v1311_v62, %v2013_v45 }
 0x80c   :  { %v1639_v21 = vpop.eup %1638  ;;  %v1415_v52 = vsel %vm779_vm10, %v1414_v57, %v1413_v41 }
 0x80d   :  { %v1424_v59 = vsel %vm520_vm6, %v1415_v52, %v1423_v14  ;;  %1429 = vrot.lane.b32.xlu0 %v1639_v21, %s1646_s6 }
 0x811   :  { %v1320_v54 = vpop.xlane.xlu0 %1319 }
 0x812   :  { %v1417_v55 = vperm.slane %v1320_v54, %v2035_v47 }
 0x814   :  { %v1418_v43 = vsel %vm779_vm10, %v1417_v55, %v1416_v2 }
 0x815   :  { %v1425_v31 = vsel %vm522_vm7, %v1418_v43, %v1424_v59 }
 0x816   :  { %v1427_v24 = vsel %vm811_vm12, %v1425_v31, 0.0 }
 0x817   :  { %1439 = vst [vmem:[%s2396_s11 + $0x28] sm:$0xff] %v1427_v24 }
 0x87f   :  { %v1430_v25 = vpop.permute.xlu0 %1429 }
 0x880   :  { %v1433_v26 = vsel %vm1432_vm0, %v1430_v25, 0.0 }
 0x881   :  { %1440 = vst [vmem:[%s2396_s11 + $0x30] sm:$0xff] %v1433_v26 }

</bundles_post_ra>
